<compile_context>
chip_gen: v7x
topology: tpu7x:2x2x1
jax: 0.10.0
libtpu: 0.0.40
codegen_flags: <defaults>
</compile_context>

<pallas_src>
import jax
import jax.numpy as jnp
from jax import lax
from jax.experimental import pallas as pl
from jax.experimental.pallas import tpu as pltpu

# ----------------------- synthetic "BERT" config (small) -----------------------
VOCAB = 100
MAX_POS = 64
TYPE_VOCAB = 2
HIDDEN = 32
NUM_HEADS = 4
HEAD_DIM = HIDDEN // NUM_HEADS
INTERMEDIATE = 64
NUM_LAYERS = 2
KERNEL_SIZE = 3                  # CNN head kernel size (odd -> 'same' padding)
PAD = (KERNEL_SIZE - 1) // 2
LN_EPS = 1e-12

HP = 128                         # lane-padded hidden width       (HIDDEN -> 128)
IP = 128                         # lane-padded intermediate width (INTERMEDIATE -> 128)


# ------------------------------- in-kernel helpers ------------------------------
def _lane_mask():
    lane = lax.broadcasted_iota(jnp.int32, (1, HP), 1)
    return (lane < HIDDEN).astype(jnp.float32)


def _masked_layernorm(z, g, b, mask):
    # z: (T, HP) with padded lanes == 0; statistics over the HIDDEN valid lanes.
    inv_h = 1.0 / HIDDEN
    mu = jnp.sum(z, axis=-1, keepdims=True) * inv_h
    zc = (z - mu) * mask
    var = jnp.sum(zc * zc, axis=-1, keepdims=True) * inv_h
    return zc * lax.rsqrt(var + LN_EPS) * g + b


def _gelu(y):
    # TODO(synk): erf-based GELU in the reference; tanh approximation (Mosaic-safe).
    return 0.5 * y * (1.0 + jnp.tanh(0.7978845608028654 * (y + 0.044715 * y * y * y)))


# --------------------------- fused BERT+CNN Pallas kernel -----------------------
def _bert_cnn_kernel(x_ref, embv_ref, convw_ref, wqkv_ref, wo_ref, wi_ref,
                     wo2_ref, vec_ref, o_ref, h_ref):
    l = pl.program_id(1)
    T = o_ref.shape[0]
    mask = _lane_mask()

    # --- layer 0: embedding LayerNorm into the resident VMEM activation.
    @pl.when(l == 0)
    def _():
        h_ref[...] = _masked_layernorm(x_ref[...], embv_ref[0:1, :],
                                       embv_ref[1:2, :], mask)

    x = h_ref[...]                                    # (T, HP) f32, padded lanes 0
    xb = x.astype(jnp.bfloat16)

    # --- fused QKV projection: Q lanes [0:32), K [32:64), V [64:96), one 128-lane tile
    qkv = (jnp.dot(xb, wqkv_ref[...], preferred_element_type=jnp.float32)
           + vec_ref[0:1, :])                         # (T, HP) f32

    # --- multi-head self-attention; per-head accumulation into the output proj.
    # TODO(synk): switch this static head unroll to lax.fori_loop/grid at real sizes.
    scale = 1.0 / (HEAD_DIM ** 0.5)
    acc = jnp.zeros((T, HP), jnp.float32)
    for h in range(NUM_HEADS):
        c0 = h * HEAD_DIM
        q = qkv[:, c0:c0 + HEAD_DIM]                              # (T, D)
        k = qkv[:, HIDDEN + c0:HIDDEN + c0 + HEAD_DIM]
        v = qkv[:, 2 * HIDDEN + c0:2 * HIDDEN + c0 + HEAD_DIM]
        s = lax.dot_general(q, k, (((1,), (1,)), ((), ())),
                            preferred_element_type=jnp.float32) * scale
        s = s - jnp.max(s, axis=-1, keepdims=True)
        p = jnp.exp(s)
        p = p / jnp.sum(p, axis=-1, keepdims=True)                # exact softmax
        ctx = jnp.dot(p, v, preferred_element_type=jnp.float32)   # (T, D)
        acc = acc + jnp.dot(ctx.astype(jnp.bfloat16), wo_ref[h],  # (T, HP)
                            preferred_element_type=jnp.float32)
    attn = acc + vec_ref[1:2, :]

    h1 = _masked_layernorm(attn + x, vec_ref[2:3, :], vec_ref[3:4, :], mask)

    # --- FFN
    inter = (jnp.dot(h1.astype(jnp.bfloat16), wi_ref[...],
                     preferred_element_type=jnp.float32) + vec_ref[4:5, :])
    inter = _gelu(inter)
    ffn = (jnp.dot(inter.astype(jnp.bfloat16), wo2_ref[...],
                   preferred_element_type=jnp.float32) + vec_ref[5:6, :])
    out = _masked_layernorm(ffn + h1, vec_ref[6:7, :], vec_ref[7:8, :], mask)
    h_ref[...] = out                                  # carry to next layer step

    # --- last layer: Conv1d head over the sequence axis (bias=False, 'same' pad).
    @pl.when(l == pl.num_programs(1) - 1)
    def _():
        row = lax.broadcasted_iota(jnp.int32, (T, T), 0)
        col = lax.broadcasted_iota(jnp.int32, (T, T), 1)
        ob = out.astype(jnp.bfloat16)
        acc_c = jnp.zeros((T, HP), jnp.float32)
        for k in range(KERNEL_SIZE):
            # Time shift + zero padding as a tiny 0/1 MXU matmul: no misaligned
            # sublane slices, no jnp.pad, no relayout copies.
            sel = ((col - row) == (k - PAD)).astype(jnp.bfloat16)     # (T, T)
            xk = jnp.dot(sel, ob, preferred_element_type=jnp.float32)
            acc_c = acc_c + jnp.dot(xk.astype(jnp.bfloat16), convw_ref[k],
                                    preferred_element_type=jnp.float32)
        o_ref[...] = acc_c


# ---------------------------- parameter construction ----------------------------
def init_params(key):
    def norm(k, shape, scale=0.02):
        return scale * jax.random.normal(k, shape, dtype=jnp.float32)

    def pad2(w, rows, cols):
        out = jnp.zeros((rows, cols), jnp.float32)
        return out.at[:w.shape[0], :w.shape[1]].set(w)

    keys = iter(jax.random.split(key, 64))

    p = {
        "word_emb": pad2(norm(next(keys), (VOCAB, HIDDEN)), VOCAB, HP),
        "pos_emb": pad2(norm(next(keys), (MAX_POS, HIDDEN)), MAX_POS, HP),
        "type_emb": pad2(norm(next(keys), (TYPE_VOCAB, HIDDEN)), TYPE_VOCAB, HP),
    }
    # Embedding LayerNorm params packed as (2, HP): row0 gamma, row1 beta.
    embv = jnp.zeros((2, HP), jnp.float32).at[0, :HIDDEN].set(1.0)
    p["emb_vec"] = embv

    wqkv_l, wo_l, wi_l, wo2_l, vec_l = [], [], [], [], []
    for _ in range(NUM_LAYERS):
        wq = norm(next(keys), (HIDDEN, HIDDEN))   # (in, out) layout
        wk = norm(next(keys), (HIDDEN, HIDDEN))
        wv = norm(next(keys), (HIDDEN, HIDDEN))
        wqkv = jnp.zeros((HP, HP), jnp.float32)
        wqkv = wqkv.at[:HIDDEN, 0:HIDDEN].set(wq)
        wqkv = wqkv.at[:HIDDEN, HIDDEN:2 * HIDDEN].set(wk)
        wqkv = wqkv.at[:HIDDEN, 2 * HIDDEN:3 * HIDDEN].set(wv)
        wqkv_l.append(wqkv)

        wo = pad2(norm(next(keys), (HIDDEN, HIDDEN)), HIDDEN, HP)      # (32, 128)
        wo_l.append(wo.reshape(NUM_HEADS, HEAD_DIM, HP))               # per-head slabs

        wi_l.append(pad2(norm(next(keys), (HIDDEN, INTERMEDIATE)), HP, IP))
        wo2_l.append(pad2(norm(next(keys), (INTERMEDIATE, HIDDEN)), IP, HP))

        # All per-layer 128-wide vectors in one (8,128) tile:
        # 0:bqkv 1:bo 2:ln1_g 3:ln1_b 4:bi 5:bo2 6:ln2_g 7:ln2_b
        vec = jnp.zeros((8, HP), jnp.float32)
        vec = vec.at[2, :HIDDEN].set(1.0)
        vec = vec.at[6, :HIDDEN].set(1.0)
        vec_l.append(vec)

    p["wqkv"] = jnp.stack(wqkv_l).astype(jnp.bfloat16)   # (L, HP, HP)
    p["wo"] = jnp.stack(wo_l).astype(jnp.bfloat16)       # (L, H, D, HP)
    p["wi"] = jnp.stack(wi_l).astype(jnp.bfloat16)       # (L, HP, IP)
    p["wo2"] = jnp.stack(wo2_l).astype(jnp.bfloat16)     # (L, IP, HP)
    p["vecs"] = jnp.stack(vec_l)                          # (L, 8, HP) f32

    # CNN head: torch Conv1d weight (C_out, C_in, K) -> per-tap (in, out), padded.
    conv_w = norm(next(keys), (HIDDEN, HIDDEN, KERNEL_SIZE), scale=0.1)
    taps = jnp.zeros((KERNEL_SIZE, HP, HP), jnp.float32)
    for k in range(KERNEL_SIZE):
        taps = taps.at[k, :HIDDEN, :HIDDEN].set(conv_w[:, :, k].T)
    p["conv_w"] = taps.astype(jnp.bfloat16)
    return p


# --------------------------------- forward pass ---------------------------------
def bert_cnn_forward(params, input_ids):
    B, T = input_ids.shape
    # Embedding gather + sum stays in XLA glue; tables are zero-padded to 128
    # lanes so padded lanes are exactly zero entering the kernel.
    x = (jnp.take(params["word_emb"], input_ids, axis=0)
         + params["pos_emb"][:T][None, :, :]
         + params["type_emb"][0][None, None, :]).reshape(B * T, HP)

    out = pl.pallas_call(
        _bert_cnn_kernel,
        out_shape=jax.ShapeDtypeStruct((B * T, HP), jnp.float32),
        grid=(B, NUM_LAYERS),
        in_specs=[
            pl.BlockSpec((T, HP), lambda b, l: (b, 0)),                    # embeddings
            pl.BlockSpec((2, HP), lambda b, l: (0, 0)),                    # emb LN vec
            pl.BlockSpec((KERNEL_SIZE, HP, HP), lambda b, l: (0, 0, 0)),   # conv taps
            pl.BlockSpec((None, HP, HP), lambda b, l: (l, 0, 0)),          # wqkv[l]
            pl.BlockSpec((None, NUM_HEADS, HEAD_DIM, HP),
                         lambda b, l: (l, 0, 0, 0)),                       # wo[l]
            pl.BlockSpec((None, HP, IP), lambda b, l: (l, 0, 0)),          # wi[l]
            pl.BlockSpec((None, IP, HP), lambda b, l: (l, 0, 0)),          # wo2[l]
            pl.BlockSpec((None, 8, HP), lambda b, l: (l, 0, 0)),           # vecs[l]
        ],
        out_specs=pl.BlockSpec((T, HP), lambda b, l: (b, 0)),
        scratch_shapes=[pltpu.VMEM((T, HP), jnp.float32)],                 # resident act
        compiler_params=pltpu.CompilerParams(
            dimension_semantics=("parallel", "arbitrary")),
    )(x, params["emb_vec"], params["conv_w"], params["wqkv"], params["wo"],
      params["wi"], params["wo2"], params["vecs"])

    return out[:, :HIDDEN].reshape(B, T, HIDDEN)


# ------------------------------------- main --------------------------------------
if __name__ == "__main__":
    key = jax.random.PRNGKey(0)
    k_params, k_ids = jax.random.split(key)
    params = init_params(k_params)

    B, T = 2, 8
    input_ids = jax.random.randint(k_ids, (B, T), 0, VOCAB, dtype=jnp.int32)

    fwd = jax.jit(bert_cnn_forward)
    out = jax.block_until_ready(fwd(params, input_ids))

    assert out.shape == (B, T, HIDDEN), out.shape
    assert bool(jnp.all(jnp.isfinite(out)))
    print("KERNEL_OK")
</pallas_src>

<mosaic_0001>
module attributes {stable_mosaic.version = 11 : i64} {
  func.func @_bert_cnn_kernel(%arg0: i32, %arg1: i32, %arg2: memref<8x128xf32, #tpu.memory_space<vmem>>, %arg3: memref<2x128xf32, #tpu.memory_space<vmem>>, %arg4: memref<3x128x128xbf16, #tpu.memory_space<vmem>>, %arg5: memref<1x128x128xbf16, #tpu.memory_space<vmem>>, %arg6: memref<1x4x8x128xbf16, #tpu.memory_space<vmem>>, %arg7: memref<1x128x128xbf16, #tpu.memory_space<vmem>>, %arg8: memref<1x128x128xbf16, #tpu.memory_space<vmem>>, %arg9: memref<1x8x128xf32, #tpu.memory_space<vmem>>, %arg10: memref<8x128xf32, #tpu.memory_space<vmem>>, %arg11: memref<8x128xf32, #tpu.memory_space<vmem>>) attributes {dimension_semantics = [#tpu.dimension_semantics<parallel>, #tpu.dimension_semantics<arbitrary>], iteration_bounds = array<i64: 2, 2>, scalar_prefetch = 0 : i64, scratch_operands = 1 : i64, tpu.core_type = #tpu.core_type<tc>, window_params = [{transform_indices = @transform_0, window_bounds = array<i64: 8, 128>}, {pipeline_mode = #tpu.pipeline_mode<synchronous>, transform_indices = @transform_1, window_bounds = array<i64: 2, 128>}, {pipeline_mode = #tpu.pipeline_mode<synchronous>, transform_indices = @transform_2, window_bounds = array<i64: 3, 128, 128>}, {transform_indices = @transform_3, window_bounds = array<i64: 1, 128, 128>}, {transform_indices = @transform_4, window_bounds = array<i64: 1, 4, 8, 128>}, {transform_indices = @transform_5, window_bounds = array<i64: 1, 128, 128>}, {transform_indices = @transform_6, window_bounds = array<i64: 1, 128, 128>}, {transform_indices = @transform_7, window_bounds = array<i64: 1, 8, 128>}, {transform_indices = @transform_8, window_bounds = array<i64: 8, 128>}]} {
    %0 = tpu.iota {dimensions = array<i32: 1>} : vector<1x128xi32>
    %c32_i32 = arith.constant 32 : i32
    %1 = vector.broadcast %c32_i32 : i32 to vector<1x128xi32>
    %2 = arith.cmpi slt, %0, %1 : vector<1x128xi32>
    %3 = arith.extui %2 : vector<1x128xi1> to vector<1x128xi32>
    %4 = arith.sitofp %3 : vector<1x128xi32> to vector<1x128xf32>
    %c0_i32 = arith.constant 0 : i32
    %5 = arith.cmpi eq, %arg1, %c0_i32 : i32
    %6 = arith.extui %5 : i1 to i32
    %c0_i32_0 = arith.constant 0 : i32
    %7 = arith.cmpi ne, %6, %c0_i32_0 : i32
    scf.if %7 {
      %c0_88 = arith.constant 0 : index
      %c0_89 = arith.constant 0 : index
      %193 = vector.load %arg2[%c0_88, %c0_89] : memref<8x128xf32, #tpu.memory_space<vmem>>, vector<8x128xf32>
      %c0_90 = arith.constant 0 : index
      %c0_91 = arith.constant 0 : index
      %194 = vector.load %arg3[%c0_90, %c0_91] : memref<2x128xf32, #tpu.memory_space<vmem>>, vector<1x128xf32>
      %c1_92 = arith.constant 1 : index
      %c0_93 = arith.constant 0 : index
      %195 = vector.load %arg3[%c1_92, %c0_93] : memref<2x128xf32, #tpu.memory_space<vmem>>, vector<1x128xf32>
      %cst_94 = arith.constant dense<0.000000e+00> : vector<8xf32>
      %196 = vector.multi_reduction <add>, %193, %cst_94 [1] : vector<8x128xf32> to vector<8xf32>
      %197 = vector.shape_cast %196 : vector<8xf32> to vector<8x1xf32>
      %cst_95 = arith.constant 3.125000e-02 : f32
      %198 = vector.broadcast %cst_95 : f32 to vector<8x1xf32>
      %199 = arith.mulf %197, %198 : vector<8x1xf32>
      %200 = vector.broadcast %199 : vector<8x1xf32> to vector<8x128xf32>
      %201 = arith.subf %193, %200 : vector<8x128xf32>
      %202 = vector.broadcast %4 : vector<1x128xf32> to vector<8x128xf32>
      %203 = arith.mulf %201, %202 : vector<8x128xf32>
      %204 = arith.mulf %203, %203 : vector<8x128xf32>
      %cst_96 = arith.constant dense<0.000000e+00> : vector<8xf32>
      %205 = vector.multi_reduction <add>, %204, %cst_96 [1] : vector<8x128xf32> to vector<8xf32>
      %206 = vector.shape_cast %205 : vector<8xf32> to vector<8x1xf32>
      %cst_97 = arith.constant 3.125000e-02 : f32
      %207 = vector.broadcast %cst_97 : f32 to vector<8x1xf32>
      %208 = arith.mulf %206, %207 : vector<8x1xf32>
      %cst_98 = arith.constant 9.99999996E-13 : f32
      %209 = vector.broadcast %cst_98 : f32 to vector<8x1xf32>
      %210 = arith.addf %208, %209 : vector<8x1xf32>
      %211 = math.rsqrt %210 : vector<8x1xf32>
      %212 = vector.broadcast %211 : vector<8x1xf32> to vector<8x128xf32>
      %213 = arith.mulf %203, %212 : vector<8x128xf32>
      %214 = vector.broadcast %194 : vector<1x128xf32> to vector<8x128xf32>
      %215 = arith.mulf %213, %214 : vector<8x128xf32>
      %216 = vector.broadcast %195 : vector<1x128xf32> to vector<8x128xf32>
      %217 = arith.addf %215, %216 : vector<8x128xf32>
      %c0_99 = arith.constant 0 : index
      %c0_100 = arith.constant 0 : index
      %218 = vector.load %arg11[%c0_99, %c0_100] : memref<8x128xf32, #tpu.memory_space<vmem>>, vector<8x128xf32>
      tpu.vector_store %arg11[%c0_99, %c0_100], %217 {strides = array<i32>} : memref<8x128xf32, #tpu.memory_space<vmem>>, vector<8x128xf32>,
    } else {
    }
    %c0 = arith.constant 0 : index
    %c0_1 = arith.constant 0 : index
    %8 = vector.load %arg11[%c0, %c0_1] : memref<8x128xf32, #tpu.memory_space<vmem>>, vector<8x128xf32>
    %9 = arith.truncf %8 : vector<8x128xf32> to vector<8x128xbf16>
    %c0_2 = arith.constant 0 : index
    %c0_3 = arith.constant 0 : index
    %c0_4 = arith.constant 0 : index
    %10 = vector.load %arg5[%c0_2, %c0_3, %c0_4] : memref<1x128x128xbf16, #tpu.memory_space<vmem>>, vector<1x128x128xbf16>
    %11 = vector.shape_cast %10 : vector<1x128x128xbf16> to vector<128x128xbf16>
    %cst = arith.constant dense<0.000000e+00> : vector<8x128xf32>
    %12 = tpu.matmul %9, %11, %cst {dimension_numbers = #tpu.dot_dimension_numbers<[1], [0], [0], [1], [0, 0, 1, 1], [], []>} : vector<8x128xbf16>, vector<128x128xbf16>, vector<8x128xf32> -> vector<8x128xf32>
    %c0_5 = arith.constant 0 : index
    %c0_6 = arith.constant 0 : index
    %c0_7 = arith.constant 0 : index
    %13 = vector.load %arg9[%c0_5, %c0_6, %c0_7] : memref<1x8x128xf32, #tpu.memory_space<vmem>>, vector<1x1x128xf32>
    %14 = vector.shape_cast %13 : vector<1x1x128xf32> to vector<1x128xf32>
    %15 = vector.broadcast %14 : vector<1x128xf32> to vector<8x128xf32>
    %16 = arith.addf %12, %15 : vector<8x128xf32>
    %cst_8 = arith.constant 0.000000e+00 : f32
    %17 = vector.broadcast %cst_8 : f32 to vector<8x128xf32>
    %18 = vector.extract_strided_slice %16 {offsets = [0, 0], sizes = [8, 8], strides = [1, 1]} : vector<8x128xf32> to vector<8x8xf32>
    %19 = vector.extract_strided_slice %16 {offsets = [0, 32], sizes = [8, 8], strides = [1, 1]} : vector<8x128xf32> to vector<8x8xf32>
    %20 = vector.extract_strided_slice %16 {offsets = [0, 64], sizes = [8, 8], strides = [1, 1]} : vector<8x128xf32> to vector<8x8xf32>
    %cst_9 = arith.constant dense<0.000000e+00> : vector<8x8xf32>
    %21 = tpu.matmul %18, %19, %cst_9 {dimension_numbers = #tpu.dot_dimension_numbers<[1], [1], [0], [0], [0, 0, 1, 0], [], []>} : vector<8x8xf32>, vector<8x8xf32>, vector<8x8xf32> -> vector<8x8xf32>
    %cst_10 = arith.constant 0.353553385 : f32
    %22 = vector.broadcast %cst_10 : f32 to vector<8x8xf32>
    %23 = arith.mulf %21, %22 : vector<8x8xf32>
    %cst_11 = arith.constant dense<0xFF800000> : vector<8xf32>
    %24 = vector.multi_reduction <maximumf>, %23, %cst_11 [1] : vector<8x8xf32> to vector<8xf32>
    %25 = vector.shape_cast %24 : vector<8xf32> to vector<8x1xf32>
    %26 = vector.broadcast %25 : vector<8x1xf32> to vector<8x8xf32>
    %27 = arith.subf %23, %26 : vector<8x8xf32>
    %28 = math.exp %27 : vector<8x8xf32>
    %cst_12 = arith.constant dense<0.000000e+00> : vector<8xf32>
    %29 = vector.multi_reduction <add>, %28, %cst_12 [1] : vector<8x8xf32> to vector<8xf32>
    %30 = vector.shape_cast %29 : vector<8xf32> to vector<8x1xf32>
    %31 = vector.broadcast %30 : vector<8x1xf32> to vector<8x8xf32>
    %32 = arith.divf %28, %31 : vector<8x8xf32>
    %cst_13 = arith.constant dense<0.000000e+00> : vector<8x8xf32>
    %33 = tpu.matmul %32, %20, %cst_13 {dimension_numbers = #tpu.dot_dimension_numbers<[1], [0], [0], [1], [0, 0, 1, 1], [], []>} : vector<8x8xf32>, vector<8x8xf32>, vector<8x8xf32> -> vector<8x8xf32>
    %34 = arith.truncf %33 : vector<8x8xf32> to vector<8x8xbf16>
    %c0_14 = arith.constant 0 : index
    %c0_15 = arith.constant 0 : index
    %c0_16 = arith.constant 0 : index
    %c0_17 = arith.constant 0 : index
    %35 = vector.load %arg6[%c0_14, %c0_15, %c0_16, %c0_17] : memref<1x4x8x128xbf16, #tpu.memory_space<vmem>>, vector<1x1x8x128xbf16>
    %36 = vector.shape_cast %35 : vector<1x1x8x128xbf16> to vector<8x128xbf16>
    %cst_18 = arith.constant dense<0.000000e+00> : vector<8x128xf32>
    %37 = tpu.matmul %34, %36, %cst_18 {dimension_numbers = #tpu.dot_dimension_numbers<[1], [0], [0], [1], [0, 0, 1, 1], [], []>} : vector<8x8xbf16>, vector<8x128xbf16>, vector<8x128xf32> -> vector<8x128xf32>
    %38 = arith.addf %17, %37 : vector<8x128xf32>
    %39 = vector.extract_strided_slice %16 {offsets = [0, 8], sizes = [8, 8], strides = [1, 1]} : vector<8x128xf32> to vector<8x8xf32>
    %40 = vector.extract_strided_slice %16 {offsets = [0, 40], sizes = [8, 8], strides = [1, 1]} : vector<8x128xf32> to vector<8x8xf32>
    %41 = vector.extract_strided_slice %16 {offsets = [0, 72], sizes = [8, 8], strides = [1, 1]} : vector<8x128xf32> to vector<8x8xf32>
    %cst_19 = arith.constant dense<0.000000e+00> : vector<8x8xf32>
    %42 = tpu.matmul %39, %40, %cst_19 {dimension_numbers = #tpu.dot_dimension_numbers<[1], [1], [0], [0], [0, 0, 1, 0], [], []>} : vector<8x8xf32>, vector<8x8xf32>, vector<8x8xf32> -> vector<8x8xf32>
    %cst_20 = arith.constant 0.353553385 : f32
    %43 = vector.broadcast %cst_20 : f32 to vector<8x8xf32>
    %44 = arith.mulf %42, %43 : vector<8x8xf32>
    %cst_21 = arith.constant dense<0xFF800000> : vector<8xf32>
    %45 = vector.multi_reduction <maximumf>, %44, %cst_21 [1] : vector<8x8xf32> to vector<8xf32>
    %46 = vector.shape_cast %45 : vector<8xf32> to vector<8x1xf32>
    %47 = vector.broadcast %46 : vector<8x1xf32> to vector<8x8xf32>
    %48 = arith.subf %44, %47 : vector<8x8xf32>
    %49 = math.exp %48 : vector<8x8xf32>
    %cst_22 = arith.constant dense<0.000000e+00> : vector<8xf32>
    %50 = vector.multi_reduction <add>, %49, %cst_22 [1] : vector<8x8xf32> to vector<8xf32>
    %51 = vector.shape_cast %50 : vector<8xf32> to vector<8x1xf32>
    %52 = vector.broadcast %51 : vector<8x1xf32> to vector<8x8xf32>
    %53 = arith.divf %49, %52 : vector<8x8xf32>
    %cst_23 = arith.constant dense<0.000000e+00> : vector<8x8xf32>
    %54 = tpu.matmul %53, %41, %cst_23 {dimension_numbers = #tpu.dot_dimension_numbers<[1], [0], [0], [1], [0, 0, 1, 1], [], []>} : vector<8x8xf32>, vector<8x8xf32>, vector<8x8xf32> -> vector<8x8xf32>
    %55 = arith.truncf %54 : vector<8x8xf32> to vector<8x8xbf16>
    %c0_24 = arith.constant 0 : index
    %c1 = arith.constant 1 : index
    %c0_25 = arith.constant 0 : index
    %c0_26 = arith.constant 0 : index
    %56 = vector.load %arg6[%c0_24, %c1, %c0_25, %c0_26] : memref<1x4x8x128xbf16, #tpu.memory_space<vmem>>, vector<1x1x8x128xbf16>
    %57 = vector.shape_cast %56 : vector<1x1x8x128xbf16> to vector<8x128xbf16>
    %cst_27 = arith.constant dense<0.000000e+00> : vector<8x128xf32>
    %58 = tpu.matmul %55, %57, %cst_27 {dimension_numbers = #tpu.dot_dimension_numbers<[1], [0], [0], [1], [0, 0, 1, 1], [], []>} : vector<8x8xbf16>, vector<8x128xbf16>, vector<8x128xf32> -> vector<8x128xf32>
    %59 = arith.addf %38, %58 : vector<8x128xf32>
    %60 = vector.extract_strided_slice %16 {offsets = [0, 16], sizes = [8, 8], strides = [1, 1]} : vector<8x128xf32> to vector<8x8xf32>
    %61 = vector.extract_strided_slice %16 {offsets = [0, 48], sizes = [8, 8], strides = [1, 1]} : vector<8x128xf32> to vector<8x8xf32>
    %62 = vector.extract_strided_slice %16 {offsets = [0, 80], sizes = [8, 8], strides = [1, 1]} : vector<8x128xf32> to vector<8x8xf32>
    %cst_28 = arith.constant dense<0.000000e+00> : vector<8x8xf32>
    %63 = tpu.matmul %60, %61, %cst_28 {dimension_numbers = #tpu.dot_dimension_numbers<[1], [1], [0], [0], [0, 0, 1, 0], [], []>} : vector<8x8xf32>, vector<8x8xf32>, vector<8x8xf32> -> vector<8x8xf32>
    %cst_29 = arith.constant 0.353553385 : f32
    %64 = vector.broadcast %cst_29 : f32 to vector<8x8xf32>
    %65 = arith.mulf %63, %64 : vector<8x8xf32>
    %cst_30 = arith.constant dense<0xFF800000> : vector<8xf32>
    %66 = vector.multi_reduction <maximumf>, %65, %cst_30 [1] : vector<8x8xf32> to vector<8xf32>
    %67 = vector.shape_cast %66 : vector<8xf32> to vector<8x1xf32>
    %68 = vector.broadcast %67 : vector<8x1xf32> to vector<8x8xf32>
    %69 = arith.subf %65, %68 : vector<8x8xf32>
    %70 = math.exp %69 : vector<8x8xf32>
    %cst_31 = arith.constant dense<0.000000e+00> : vector<8xf32>
    %71 = vector.multi_reduction <add>, %70, %cst_31 [1] : vector<8x8xf32> to vector<8xf32>
    %72 = vector.shape_cast %71 : vector<8xf32> to vector<8x1xf32>
    %73 = vector.broadcast %72 : vector<8x1xf32> to vector<8x8xf32>
    %74 = arith.divf %70, %73 : vector<8x8xf32>
    %cst_32 = arith.constant dense<0.000000e+00> : vector<8x8xf32>
    %75 = tpu.matmul %74, %62, %cst_32 {dimension_numbers = #tpu.dot_dimension_numbers<[1], [0], [0], [1], [0, 0, 1, 1], [], []>} : vector<8x8xf32>, vector<8x8xf32>, vector<8x8xf32> -> vector<8x8xf32>
    %76 = arith.truncf %75 : vector<8x8xf32> to vector<8x8xbf16>
    %c0_33 = arith.constant 0 : index
    %c2 = arith.constant 2 : index
    %c0_34 = arith.constant 0 : index
    %c0_35 = arith.constant 0 : index
    %77 = vector.load %arg6[%c0_33, %c2, %c0_34, %c0_35] : memref<1x4x8x128xbf16, #tpu.memory_space<vmem>>, vector<1x1x8x128xbf16>
    %78 = vector.shape_cast %77 : vector<1x1x8x128xbf16> to vector<8x128xbf16>
    %cst_36 = arith.constant dense<0.000000e+00> : vector<8x128xf32>
    %79 = tpu.matmul %76, %78, %cst_36 {dimension_numbers = #tpu.dot_dimension_numbers<[1], [0], [0], [1], [0, 0, 1, 1], [], []>} : vector<8x8xbf16>, vector<8x128xbf16>, vector<8x128xf32> -> vector<8x128xf32>
    %80 = arith.addf %59, %79 : vector<8x128xf32>
    %81 = vector.extract_strided_slice %16 {offsets = [0, 24], sizes = [8, 8], strides = [1, 1]} : vector<8x128xf32> to vector<8x8xf32>
    %82 = vector.extract_strided_slice %16 {offsets = [0, 56], sizes = [8, 8], strides = [1, 1]} : vector<8x128xf32> to vector<8x8xf32>
    %83 = vector.extract_strided_slice %16 {offsets = [0, 88], sizes = [8, 8], strides = [1, 1]} : vector<8x128xf32> to vector<8x8xf32>
    %cst_37 = arith.constant dense<0.000000e+00> : vector<8x8xf32>
    %84 = tpu.matmul %81, %82, %cst_37 {dimension_numbers = #tpu.dot_dimension_numbers<[1], [1], [0], [0], [0, 0, 1, 0], [], []>} : vector<8x8xf32>, vector<8x8xf32>, vector<8x8xf32> -> vector<8x8xf32>
    %cst_38 = arith.constant 0.353553385 : f32
    %85 = vector.broadcast %cst_38 : f32 to vector<8x8xf32>
    %86 = arith.mulf %84, %85 : vector<8x8xf32>
    %cst_39 = arith.constant dense<0xFF800000> : vector<8xf32>
    %87 = vector.multi_reduction <maximumf>, %86, %cst_39 [1] : vector<8x8xf32> to vector<8xf32>
    %88 = vector.shape_cast %87 : vector<8xf32> to vector<8x1xf32>
    %89 = vector.broadcast %88 : vector<8x1xf32> to vector<8x8xf32>
    %90 = arith.subf %86, %89 : vector<8x8xf32>
    %91 = math.exp %90 : vector<8x8xf32>
    %cst_40 = arith.constant dense<0.000000e+00> : vector<8xf32>
    %92 = vector.multi_reduction <add>, %91, %cst_40 [1] : vector<8x8xf32> to vector<8xf32>
    %93 = vector.shape_cast %92 : vector<8xf32> to vector<8x1xf32>
    %94 = vector.broadcast %93 : vector<8x1xf32> to vector<8x8xf32>
    %95 = arith.divf %91, %94 : vector<8x8xf32>
    %cst_41 = arith.constant dense<0.000000e+00> : vector<8x8xf32>
    %96 = tpu.matmul %95, %83, %cst_41 {dimension_numbers = #tpu.dot_dimension_numbers<[1], [0], [0], [1], [0, 0, 1, 1], [], []>} : vector<8x8xf32>, vector<8x8xf32>, vector<8x8xf32> -> vector<8x8xf32>
    %97 = arith.truncf %96 : vector<8x8xf32> to vector<8x8xbf16>
    %c0_42 = arith.constant 0 : index
    %c3 = arith.constant 3 : index
    %c0_43 = arith.constant 0 : index
    %c0_44 = arith.constant 0 : index
    %98 = vector.load %arg6[%c0_42, %c3, %c0_43, %c0_44] : memref<1x4x8x128xbf16, #tpu.memory_space<vmem>>, vector<1x1x8x128xbf16>
    %99 = vector.shape_cast %98 : vector<1x1x8x128xbf16> to vector<8x128xbf16>
    %cst_45 = arith.constant dense<0.000000e+00> : vector<8x128xf32>
    %100 = tpu.matmul %97, %99, %cst_45 {dimension_numbers = #tpu.dot_dimension_numbers<[1], [0], [0], [1], [0, 0, 1, 1], [], []>} : vector<8x8xbf16>, vector<8x128xbf16>, vector<8x128xf32> -> vector<8x128xf32>
    %101 = arith.addf %80, %100 : vector<8x128xf32>
    %c0_46 = arith.constant 0 : index
    %c1_47 = arith.constant 1 : index
    %c0_48 = arith.constant 0 : index
    %102 = vector.load %arg9[%c0_46, %c1_47, %c0_48] : memref<1x8x128xf32, #tpu.memory_space<vmem>>, vector<1x1x128xf32>
    %103 = vector.shape_cast %102 : vector<1x1x128xf32> to vector<1x128xf32>
    %104 = vector.broadcast %103 : vector<1x128xf32> to vector<8x128xf32>
    %105 = arith.addf %101, %104 : vector<8x128xf32>
    %106 = arith.addf %105, %8 : vector<8x128xf32>
    %c0_49 = arith.constant 0 : index
    %c2_50 = arith.constant 2 : index
    %c0_51 = arith.constant 0 : index
    %107 = vector.load %arg9[%c0_49, %c2_50, %c0_51] : memref<1x8x128xf32, #tpu.memory_space<vmem>>, vector<1x1x128xf32>
    %108 = vector.shape_cast %107 : vector<1x1x128xf32> to vector<1x128xf32>
    %c0_52 = arith.constant 0 : index
    %c3_53 = arith.constant 3 : index
    %c0_54 = arith.constant 0 : index
    %109 = vector.load %arg9[%c0_52, %c3_53, %c0_54] : memref<1x8x128xf32, #tpu.memory_space<vmem>>, vector<1x1x128xf32>
    %110 = vector.shape_cast %109 : vector<1x1x128xf32> to vector<1x128xf32>
    %cst_55 = arith.constant dense<0.000000e+00> : vector<8xf32>
    %111 = vector.multi_reduction <add>, %106, %cst_55 [1] : vector<8x128xf32> to vector<8xf32>
    %112 = vector.shape_cast %111 : vector<8xf32> to vector<8x1xf32>
    %cst_56 = arith.constant 3.125000e-02 : f32
    %113 = vector.broadcast %cst_56 : f32 to vector<8x1xf32>
    %114 = arith.mulf %112, %113 : vector<8x1xf32>
    %115 = vector.broadcast %114 : vector<8x1xf32> to vector<8x128xf32>
    %116 = arith.subf %106, %115 : vector<8x128xf32>
    %117 = vector.broadcast %4 : vector<1x128xf32> to vector<8x128xf32>
    %118 = arith.mulf %116, %117 : vector<8x128xf32>
    %119 = arith.mulf %118, %118 : vector<8x128xf32>
    %cst_57 = arith.constant dense<0.000000e+00> : vector<8xf32>
    %120 = vector.multi_reduction <add>, %119, %cst_57 [1] : vector<8x128xf32> to vector<8xf32>
    %121 = vector.shape_cast %120 : vector<8xf32> to vector<8x1xf32>
    %cst_58 = arith.constant 3.125000e-02 : f32
    %122 = vector.broadcast %cst_58 : f32 to vector<8x1xf32>
    %123 = arith.mulf %121, %122 : vector<8x1xf32>
    %cst_59 = arith.constant 9.99999996E-13 : f32
    %124 = vector.broadcast %cst_59 : f32 to vector<8x1xf32>
    %125 = arith.addf %123, %124 : vector<8x1xf32>
    %126 = math.rsqrt %125 : vector<8x1xf32>
    %127 = vector.broadcast %126 : vector<8x1xf32> to vector<8x128xf32>
    %128 = arith.mulf %118, %127 : vector<8x128xf32>
    %129 = vector.broadcast %108 : vector<1x128xf32> to vector<8x128xf32>
    %130 = arith.mulf %128, %129 : vector<8x128xf32>
    %131 = vector.broadcast %110 : vector<1x128xf32> to vector<8x128xf32>
    %132 = arith.addf %130, %131 : vector<8x128xf32>
    %133 = arith.truncf %132 : vector<8x128xf32> to vector<8x128xbf16>
    %c0_60 = arith.constant 0 : index
    %c0_61 = arith.constant 0 : index
    %c0_62 = arith.constant 0 : index
    %134 = vector.load %arg7[%c0_60, %c0_61, %c0_62] : memref<1x128x128xbf16, #tpu.memory_space<vmem>>, vector<1x128x128xbf16>
    %135 = vector.shape_cast %134 : vector<1x128x128xbf16> to vector<128x128xbf16>
    %cst_63 = arith.constant dense<0.000000e+00> : vector<8x128xf32>
    %136 = tpu.matmul %133, %135, %cst_63 {dimension_numbers = #tpu.dot_dimension_numbers<[1], [0], [0], [1], [0, 0, 1, 1], [], []>} : vector<8x128xbf16>, vector<128x128xbf16>, vector<8x128xf32> -> vector<8x128xf32>
    %c0_64 = arith.constant 0 : index
    %c4 = arith.constant 4 : index
    %c0_65 = arith.constant 0 : index
    %137 = vector.load %arg9[%c0_64, %c4, %c0_65] : memref<1x8x128xf32, #tpu.memory_space<vmem>>, vector<1x1x128xf32>
    %138 = vector.shape_cast %137 : vector<1x1x128xf32> to vector<1x128xf32>
    %139 = vector.broadcast %138 : vector<1x128xf32> to vector<8x128xf32>
    %140 = arith.addf %136, %139 : vector<8x128xf32>
    %cst_66 = arith.constant 5.000000e-01 : f32
    %141 = vector.broadcast %cst_66 : f32 to vector<8x128xf32>
    %142 = arith.mulf %141, %140 : vector<8x128xf32>
    %cst_67 = arith.constant 4.471500e-02 : f32
    %143 = vector.broadcast %cst_67 : f32 to vector<8x128xf32>
    %144 = arith.mulf %143, %140 : vector<8x128xf32>
    %145 = arith.mulf %144, %140 : vector<8x128xf32>
    %146 = arith.mulf %145, %140 : vector<8x128xf32>
    %147 = arith.addf %140, %146 : vector<8x128xf32>
    %cst_68 = arith.constant 0.797884583 : f32
    %148 = vector.broadcast %cst_68 : f32 to vector<8x128xf32>
    %149 = arith.mulf %148, %147 : vector<8x128xf32>
    %150 = math.tanh %149 : vector<8x128xf32>
    %cst_69 = arith.constant 1.000000e+00 : f32
    %151 = vector.broadcast %cst_69 : f32 to vector<8x128xf32>
    %152 = arith.addf %151, %150 : vector<8x128xf32>
    %153 = arith.mulf %142, %152 : vector<8x128xf32>
    %154 = arith.truncf %153 : vector<8x128xf32> to vector<8x128xbf16>
    %c0_70 = arith.constant 0 : index
    %c0_71 = arith.constant 0 : index
    %c0_72 = arith.constant 0 : index
    %155 = vector.load %arg8[%c0_70, %c0_71, %c0_72] : memref<1x128x128xbf16, #tpu.memory_space<vmem>>, vector<1x128x128xbf16>
    %156 = vector.shape_cast %155 : vector<1x128x128xbf16> to vector<128x128xbf16>
    %cst_73 = arith.constant dense<0.000000e+00> : vector<8x128xf32>
    %157 = tpu.matmul %154, %156, %cst_73 {dimension_numbers = #tpu.dot_dimension_numbers<[1], [0], [0], [1], [0, 0, 1, 1], [], []>} : vector<8x128xbf16>, vector<128x128xbf16>, vector<8x128xf32> -> vector<8x128xf32>
    %c0_74 = arith.constant 0 : index
    %c5 = arith.constant 5 : index
    %c0_75 = arith.constant 0 : index
    %158 = vector.load %arg9[%c0_74, %c5, %c0_75] : memref<1x8x128xf32, #tpu.memory_space<vmem>>, vector<1x1x128xf32>
    %159 = vector.shape_cast %158 : vector<1x1x128xf32> to vector<1x128xf32>
    %160 = vector.broadcast %159 : vector<1x128xf32> to vector<8x128xf32>
    %161 = arith.addf %157, %160 : vector<8x128xf32>
    %162 = arith.addf %161, %132 : vector<8x128xf32>
    %c0_76 = arith.constant 0 : index
    %c6 = arith.constant 6 : index
    %c0_77 = arith.constant 0 : index
    %163 = vector.load %arg9[%c0_76, %c6, %c0_77] : memref<1x8x128xf32, #tpu.memory_space<vmem>>, vector<1x1x128xf32>
    %164 = vector.shape_cast %163 : vector<1x1x128xf32> to vector<1x128xf32>
    %c0_78 = arith.constant 0 : index
    %c7 = arith.constant 7 : index
    %c0_79 = arith.constant 0 : index
    %165 = vector.load %arg9[%c0_78, %c7, %c0_79] : memref<1x8x128xf32, #tpu.memory_space<vmem>>, vector<1x1x128xf32>
    %166 = vector.shape_cast %165 : vector<1x1x128xf32> to vector<1x128xf32>
    %cst_80 = arith.constant dense<0.000000e+00> : vector<8xf32>
    %167 = vector.multi_reduction <add>, %162, %cst_80 [1] : vector<8x128xf32> to vector<8xf32>
    %168 = vector.shape_cast %167 : vector<8xf32> to vector<8x1xf32>
    %cst_81 = arith.constant 3.125000e-02 : f32
    %169 = vector.broadcast %cst_81 : f32 to vector<8x1xf32>
    %170 = arith.mulf %168, %169 : vector<8x1xf32>
    %171 = vector.broadcast %170 : vector<8x1xf32> to vector<8x128xf32>
    %172 = arith.subf %162, %171 : vector<8x128xf32>
    %173 = vector.broadcast %4 : vector<1x128xf32> to vector<8x128xf32>
    %174 = arith.mulf %172, %173 : vector<8x128xf32>
    %175 = arith.mulf %174, %174 : vector<8x128xf32>
    %cst_82 = arith.constant dense<0.000000e+00> : vector<8xf32>
    %176 = vector.multi_reduction <add>, %175, %cst_82 [1] : vector<8x128xf32> to vector<8xf32>
    %177 = vector.shape_cast %176 : vector<8xf32> to vector<8x1xf32>
    %cst_83 = arith.constant 3.125000e-02 : f32
    %178 = vector.broadcast %cst_83 : f32 to vector<8x1xf32>
    %179 = arith.mulf %177, %178 : vector<8x1xf32>
    %cst_84 = arith.constant 9.99999996E-13 : f32
    %180 = vector.broadcast %cst_84 : f32 to vector<8x1xf32>
    %181 = arith.addf %179, %180 : vector<8x1xf32>
    %182 = math.rsqrt %181 : vector<8x1xf32>
    %183 = vector.broadcast %182 : vector<8x1xf32> to vector<8x128xf32>
    %184 = arith.mulf %174, %183 : vector<8x128xf32>
    %185 = vector.broadcast %164 : vector<1x128xf32> to vector<8x128xf32>
    %186 = arith.mulf %184, %185 : vector<8x128xf32>
    %187 = vector.broadcast %166 : vector<1x128xf32> to vector<8x128xf32>
    %188 = arith.addf %186, %187 : vector<8x128xf32>
    %c0_85 = arith.constant 0 : index
    %c0_86 = arith.constant 0 : index
    %189 = vector.load %arg11[%c0_85, %c0_86] : memref<8x128xf32, #tpu.memory_space<vmem>>, vector<8x128xf32>
    tpu.vector_store %arg11[%c0_85, %c0_86], %188 {strides = array<i32>} : memref<8x128xf32, #tpu.memory_space<vmem>>, vector<8x128xf32>,
    %c1_i32 = arith.constant 1 : i32
    %190 = arith.cmpi eq, %arg1, %c1_i32 : i32
    %191 = arith.extui %190 : i1 to i32
    %c0_i32_87 = arith.constant 0 : i32
    %192 = arith.cmpi ne, %191, %c0_i32_87 : i32
    scf.if %192 {
      %193 = tpu.iota {dimensions = array<i32: 0>} : vector<8x8xi32>
      %194 = tpu.iota {dimensions = array<i32: 1>} : vector<8x8xi32>
      %195 = arith.truncf %188 : vector<8x128xf32> to vector<8x128xbf16>
      %cst_88 = arith.constant 0.000000e+00 : f32
      %196 = vector.broadcast %cst_88 : f32 to vector<8x128xf32>
      %197 = arith.subi %194, %193 : vector<8x8xi32>
      %c-1_i32 = arith.constant -1 : i32
      %198 = vector.broadcast %c-1_i32 : i32 to vector<8x8xi32>
      %199 = arith.cmpi eq, %197, %198 : vector<8x8xi32>
      %200 = arith.extui %199 : vector<8x8xi1> to vector<8x8xi32>
      %201 = arith.sitofp %200 : vector<8x8xi32> to vector<8x8xf32>
      %202 = arith.truncf %201 : vector<8x8xf32> to vector<8x8xbf16>
      %cst_89 = arith.constant dense<0.000000e+00> : vector<8x128xf32>
      %203 = tpu.matmul %202, %195, %cst_89 {dimension_numbers = #tpu.dot_dimension_numbers<[1], [0], [0], [1], [0, 0, 1, 1], [], []>} : vector<8x8xbf16>, vector<8x128xbf16>, vector<8x128xf32> -> vector<8x128xf32>
      %204 = arith.truncf %203 : vector<8x128xf32> to vector<8x128xbf16>
      %c0_90 = arith.constant 0 : index
      %c0_91 = arith.constant 0 : index
      %c0_92 = arith.constant 0 : index
      %205 = vector.load %arg4[%c0_90, %c0_91, %c0_92] : memref<3x128x128xbf16, #tpu.memory_space<vmem>>, vector<1x128x128xbf16>
      %206 = vector.shape_cast %205 : vector<1x128x128xbf16> to vector<128x128xbf16>
      %cst_93 = arith.constant dense<0.000000e+00> : vector<8x128xf32>
      %207 = tpu.matmul %204, %206, %cst_93 {dimension_numbers = #tpu.dot_dimension_numbers<[1], [0], [0], [1], [0, 0, 1, 1], [], []>} : vector<8x128xbf16>, vector<128x128xbf16>, vector<8x128xf32> -> vector<8x128xf32>
      %208 = arith.addf %196, %207 : vector<8x128xf32>
      %209 = arith.subi %194, %193 : vector<8x8xi32>
      %c0_i32_94 = arith.constant 0 : i32
      %210 = vector.broadcast %c0_i32_94 : i32 to vector<8x8xi32>
      %211 = arith.cmpi eq, %209, %210 : vector<8x8xi32>
      %212 = arith.extui %211 : vector<8x8xi1> to vector<8x8xi32>
      %213 = arith.sitofp %212 : vector<8x8xi32> to vector<8x8xf32>
      %214 = arith.truncf %213 : vector<8x8xf32> to vector<8x8xbf16>
      %cst_95 = arith.constant dense<0.000000e+00> : vector<8x128xf32>
      %215 = tpu.matmul %214, %195, %cst_95 {dimension_numbers = #tpu.dot_dimension_numbers<[1], [0], [0], [1], [0, 0, 1, 1], [], []>} : vector<8x8xbf16>, vector<8x128xbf16>, vector<8x128xf32> -> vector<8x128xf32>
      %216 = arith.truncf %215 : vector<8x128xf32> to vector<8x128xbf16>
      %c1_96 = arith.constant 1 : index
      %c0_97 = arith.constant 0 : index
      %c0_98 = arith.constant 0 : index
      %217 = vector.load %arg4[%c1_96, %c0_97, %c0_98] : memref<3x128x128xbf16, #tpu.memory_space<vmem>>, vector<1x128x128xbf16>
      %218 = vector.shape_cast %217 : vector<1x128x128xbf16> to vector<128x128xbf16>
      %cst_99 = arith.constant dense<0.000000e+00> : vector<8x128xf32>
      %219 = tpu.matmul %216, %218, %cst_99 {dimension_numbers = #tpu.dot_dimension_numbers<[1], [0], [0], [1], [0, 0, 1, 1], [], []>} : vector<8x128xbf16>, vector<128x128xbf16>, vector<8x128xf32> -> vector<8x128xf32>
      %220 = arith.addf %208, %219 : vector<8x128xf32>
      %221 = arith.subi %194, %193 : vector<8x8xi32>
      %c1_i32_100 = arith.constant 1 : i32
      %222 = vector.broadcast %c1_i32_100 : i32 to vector<8x8xi32>
      %223 = arith.cmpi eq, %221, %222 : vector<8x8xi32>
      %224 = arith.extui %223 : vector<8x8xi1> to vector<8x8xi32>
      %225 = arith.sitofp %224 : vector<8x8xi32> to vector<8x8xf32>
      %226 = arith.truncf %225 : vector<8x8xf32> to vector<8x8xbf16>
      %cst_101 = arith.constant dense<0.000000e+00> : vector<8x128xf32>
      %227 = tpu.matmul %226, %195, %cst_101 {dimension_numbers = #tpu.dot_dimension_numbers<[1], [0], [0], [1], [0, 0, 1, 1], [], []>} : vector<8x8xbf16>, vector<8x128xbf16>, vector<8x128xf32> -> vector<8x128xf32>
      %228 = arith.truncf %227 : vector<8x128xf32> to vector<8x128xbf16>
      %c2_102 = arith.constant 2 : index
      %c0_103 = arith.constant 0 : index
      %c0_104 = arith.constant 0 : index
      %229 = vector.load %arg4[%c2_102, %c0_103, %c0_104] : memref<3x128x128xbf16, #tpu.memory_space<vmem>>, vector<1x128x128xbf16>
      %230 = vector.shape_cast %229 : vector<1x128x128xbf16> to vector<128x128xbf16>
      %cst_105 = arith.constant dense<0.000000e+00> : vector<8x128xf32>
      %231 = tpu.matmul %228, %230, %cst_105 {dimension_numbers = #tpu.dot_dimension_numbers<[1], [0], [0], [1], [0, 0, 1, 1], [], []>} : vector<8x128xbf16>, vector<128x128xbf16>, vector<8x128xf32> -> vector<8x128xf32>
      %232 = arith.addf %220, %231 : vector<8x128xf32>
      %c0_106 = arith.constant 0 : index
      %c0_107 = arith.constant 0 : index
      %233 = vector.load %arg10[%c0_106, %c0_107] : memref<8x128xf32, #tpu.memory_space<vmem>>, vector<8x128xf32>
      tpu.vector_store %arg10[%c0_106, %c0_107], %232 {strides = array<i32>} : memref<8x128xf32, #tpu.memory_space<vmem>>, vector<8x128xf32>,
    } else {
    }
    return
  }
  func.func @transform_0(%arg0: i32, %arg1: i32) -> (i32, i32) {
    %c0_i32 = arith.constant 0 : i32
    %c0_i32_0 = arith.constant 0 : i32
    return %arg0, %c0_i32 : i32, i32
  }
  func.func @transform_1(%arg0: i32, %arg1: i32) -> (i32, i32) {
    %c0_i32 = arith.constant 0 : i32
    %c0_i32_0 = arith.constant 0 : i32
    %c0_i32_1 = arith.constant 0 : i32
    return %c0_i32, %c0_i32_0 : i32, i32
  }
  func.func @transform_2(%arg0: i32, %arg1: i32) -> (i32, i32, i32) {
    %c0_i32 = arith.constant 0 : i32
    %c0_i32_0 = arith.constant 0 : i32
    %c0_i32_1 = arith.constant 0 : i32
    %c0_i32_2 = arith.constant 0 : i32
    return %c0_i32, %c0_i32_0, %c0_i32_1 : i32, i32, i32
  }
  func.func @transform_3(%arg0: i32, %arg1: i32) -> (i32, i32, i32) {
    %c0_i32 = arith.constant 0 : i32
    %c0_i32_0 = arith.constant 0 : i32
    %c0_i32_1 = arith.constant 0 : i32
    return %arg1, %c0_i32, %c0_i32_0 : i32, i32, i32
  }
  func.func @transform_4(%arg0: i32, %arg1: i32) -> (i32, i32, i32, i32) {
    %c0_i32 = arith.constant 0 : i32
    %c0_i32_0 = arith.constant 0 : i32
    %c0_i32_1 = arith.constant 0 : i32
    %c0_i32_2 = arith.constant 0 : i32
    return %arg1, %c0_i32, %c0_i32_0, %c0_i32_1 : i32, i32, i32, i32
  }
  func.func @transform_5(%arg0: i32, %arg1: i32) -> (i32, i32, i32) {
    %c0_i32 = arith.constant 0 : i32
    %c0_i32_0 = arith.constant 0 : i32
    %c0_i32_1 = arith.constant 0 : i32
    return %arg1, %c0_i32, %c0_i32_0 : i32, i32, i32
  }
  func.func @transform_6(%arg0: i32, %arg1: i32) -> (i32, i32, i32) {
    %c0_i32 = arith.constant 0 : i32
    %c0_i32_0 = arith.constant 0 : i32
    %c0_i32_1 = arith.constant 0 : i32
    return %arg1, %c0_i32, %c0_i32_0 : i32, i32, i32
  }
  func.func @transform_7(%arg0: i32, %arg1: i32) -> (i32, i32, i32) {
    %c0_i32 = arith.constant 0 : i32
    %c0_i32_0 = arith.constant 0 : i32
    %c0_i32_1 = arith.constant 0 : i32
    return %arg1, %c0_i32, %c0_i32_0 : i32, i32, i32
  }
  func.func @transform_8(%arg0: i32, %arg1: i32) -> (i32, i32) {
    %c0_i32 = arith.constant 0 : i32
    %c0_i32_0 = arith.constant 0 : i32
    return %arg0, %c0_i32 : i32, i32
  }
}

</mosaic_0001>

<bundles_post_ra>
// kernel: bert_cnn_forward.1
= control target key start
LH: loop header
LB: loop body
LE: loop exit
PB: predicated region body
PF: predicated region fallthrough
CT: control target
= control target key end

     0   :  { %s3884_s0 = inlined_call_operand.vmem [shape: f32[16,128], index: 0, kind: input, shape index: {}]   ;;  %s3885_s1 = inlined_call_operand.vmem [shape: f32[2,128], index: 1, kind: input, shape index: {}]   ;;  %s3886_s2 = inlined_call_operand.vmem [shape: bf16[3,128,128], index: 2, kind: input, shape index: {}]   ;;  %s3887_s3 = inlined_call_operand.hbm [shape: bf16[2,128,128], index: 3, kind: input, shape index: {}]   ;;  %s3888_s4 = inlined_call_operand.vmem [shape: bf16[2,4,8,128], index: 4, kind: input, shape index: {}]   ;;  %s3889_s5 = inlined_call_operand.hbm [shape: bf16[2,128,128], index: 5, kind: input, shape index: {}]   ;;  %s3890_s6 = inlined_call_operand.hbm [shape: bf16[2,128,128], index: 6, kind: input, shape index: {}]   ;;  %s3891_s7 = inlined_call_operand.hbm [shape: f32[2,8,128], index: 7, kind: input, shape index: {}]   ;;  %s3892_s8 = inlined_call_operand.vmem [shape: f32[16,128], index: 8, kind: output, shape index: {}]  }
   0x1   :  { %3904 = sst [smem:[#allocation18_spill]] %s3886_s2 }
   0x2   :  { %3905 = sst [smem:[#allocation19_spill]] %s3887_s3 }
   0x3   :  { %3906 = sst [smem:[#allocation20_spill]] %s3889_s5 }
   0x4   :  { %13 = vsyncpa [#allocation4], 0 }
   0x5   :  { %15 = vsyncpa [#allocation4 + $0x1], 0 }
   0x6   :  { %16 = vsyncpa [#allocation6], 0 }
   0x7   :  { %18 = vsyncpa [#allocation6 + $0x1], 0 }
   0x8   :  { %19 = vsyncpa [#allocation9], 0 }
   0x9   :  { %21 = vsyncpa [#allocation9 + $0x1], 0  ;;  %s3295_s27 = smov 0   ;;  %s3297_s28 = smov 0  }
   0xa   :  { %s3299_s29 = smov 0   ;;  %s3301_s30 = smov 0  }
   0xb   :  { %s3303_s9 = smov 0   ;;  %s3305_s10 = smov 0  }
   0xc   :  { %s3307_s11 = smov 0   ;;  %s3309_s12 = smov 0  }
   0xd LB: > { %3907 = sst [smem:[#allocation13_spill]] %s3207_s29  ;;  %s3893_s13 = sadd.s32 4294967295, %s3227_s12   ;;  %s3227_s12 = sphi %s3309_s12, %s27_s12   ;;  %s3223_s11 = sphi %s3307_s11, %s3930_s11   ;;  %s3219_s10 = sphi %s3305_s10, %s3934_s10   ;;  %s3215_s9 = sphi %s3303_s9, %s3928_s9   ;;  %s3211_s30 = sphi %s3301_s30, %s3933_s30   ;;  %s3207_s29 = sphi %s3299_s29, %s3927_s29   ;;  %s3203_s28 = sphi %s3297_s28, %s3932_s28   ;;  %s3199_s27 = sphi %s3295_s27, %s3931_s27  }
   0xe   : > { %3908 = sst [smem:[#allocation14_spill]] %s3223_s11  ;;  %s36_s14 = sadd.s32 1, %s3219_s10 }
   0xf   : > { %p37_p0 = scmp.ge.s32.totalorder %s36_s14, 2  ;;  %s39_s15 = sadd.s32 1, %s3223_s11 }
  0x10   : > { %s114_s16 = sadd.s32 1, %s3207_s29  ;;  %p121_p1 = scmp.ne.s32.totalorder %s3207_s29, %s3203_s28 }
  0x11   : > { %s3936_s14 = smov (%p37_p0, %s36_s14), 0  ;;  %s3938_s15 = smov (!%p37_p0, %s39_s15), %s3223_s11 }
  0x12   : > { %3909 = sst [smem:[#allocation15_spill]] %s3936_s14  ;;  %s111_s17 = ssub.s32 %s3219_s10, %s3936_s14 }
  0x13   : > { %p122_p2 = scmp.eq.s32.totalorder %s3227_s12, 0  ;;  %p41_p3 = scmp.ge.s32.totalorder %s3938_s15, 2 }
  0x14   : > { %p112_p4 = scmp.eq.s32.totalorder %s111_s17, 0  ;;  %p127_p6 = scmp.ne.s32.totalorder %s3203_s28, %s3199_s27 }
  0x15   : > { %p123_p5 = por %p122_p2, %p121_p1  ;;  %s3940_s15 = smov (%p41_p3, %s3938_s15), 0 }
  0x16   : > { %3910 = sst [smem:[#allocation16_spill]] %s3940_s15  ;;  %p128_p7 = scmp.eq.s32.totalorder %s3893_s13, 0 }
  0x17   : > { %s3349_s18 = scalar_select %p112_p4, %s3207_s29, %s114_s16  }
  0x18   : > { %p2879_p8 = scmp.lt.s32.totalorder %s3227_s12, 4  ;;  %s3355_s19 = sand.u32 1, %s3207_s29  }
  0x19   : > { %3911 = sst [smem:[#allocation17_spill]] %s3349_s18  ;;  %p3357_p9 = por %p128_p7, %p127_p6 }
  0x1a   : > { %s3362_s21 = sshll.u32 %s3355_s19, 6  ;;  %s3365_s22 = sshll.u32 %s3219_s10, 10 }
  0x1b   : > { %s3912_s20 = scalar_select %p3357_p9, 1, 0 }
  0x1c   : > { %p3367_p10 = pnand %p2879_p8, %p123_p5  ;;  %s323_s24 = sand.u32 1, %s3227_s12  }
  0x1d   : > { %s3914_s5 = sld [smem:[#allocation20_spill]]  ;;  %s327_s16 = scalar_lea.vmem [#allocation5], %s3362_s21 }
  0x1e   : > { %s3913_s23 = scalar_select %p3367_p10, 1, 0 }
  0x1f   : > { %s334_s17 = sshll.u32 %s327_s16, 4  ;;  %s3382_s13 = scalar_lea.sflag [#allocation6], %s323_s24  ;;  %s3379_s17 = int_to_ptr.vmem [resolvable:$true] %s334_s17 }
  0x20   : > { %p3388_p13 = pneg %p3367_p10 }
  0x23   : > { %s3376_s27 = scalar_lea.hbm %s3914_s5, %s3365_s22  ;;  %s3038_s16 = scalar_lea.hbm %s3914_s5, 2048 }
  0x24   : > { %s3033_s15 = scalar_lea.hbm %s3376_s27, 1024  ;;  %p3039_p2 = scmp.lt.u32.totalorder %s3376_s27, %s3914_s5 }
  0x25   : > { %p3034_p12 = scmp.ne.s32.totalorder %s3376_s27, %s3033_s15  ;;  %p3040_p3 = scmp.lt.u32.totalorder %s3038_s16, %s3033_s15 }
  0x26   : > { %p3042_p5 = scmp.lt.u32.totalorder %s3033_s15, %s3376_s27 }
  0x27   : > { %p3036_p0 = pnand %p3388_p13, %p3034_p12  ;;  %p3041_p4 = por %p3040_p3, %p3039_p2 }
  0x29   : > { %p3037_p1 = pneg %p3036_p0  ;;  %p3043_p6 = por %p3042_p5, %p3041_p4 }
  0x2b   : > { %p3044_p7 = pnand %p3043_p6, %p3037_p1 }
  0x2d   : > { %3047 = shalt.err (!%p3044_p7)
}
  0x2e   : > { %s3048_s24 = scalar_lea.vmem %s3379_s17, 1024  ;;  %s3229_s25 = smov [#allocation5]  }
  0x2f   : > { %p3049_p8 = scmp.ne.s32.totalorder %s3379_s17, %s3048_s24  ;;  %s3053_s26 = sshll.u32 %s3229_s25, 4  ;;  %s3054_s26 = int_to_ptr.vmem [resolvable:$false] %s3053_s26 }
  0x30   : > { %s3055_s11 = scalar_lea.vmem %s3054_s26, 2048  ;;  %p3056_p11 = scmp.lt.s32.totalorder %s3379_s17, %s3054_s26 }
  0x31   : > { %p3051_p12 = pnand %p3049_p8, %p3388_p13  ;;  %p3057_p9 = scmp.lt.s32.totalorder %s3055_s11, %s3048_s24 }
  0x33   : > { %p3052_p0 = pneg %p3051_p12  ;;  %p3058_p2 = por %p3057_p9, %p3056_p11 }
  0x35   : > { %p3059_p3 = pnand %p3058_p2, %p3052_p0 }
  0x37   : > { %3062 = shalt.err (!%p3059_p3)
}
  0x38   : > { %s3897_s15 = smov 64   ;;  %s3899_s18 = smov 4  }
  0x39   : > { %2872 = dma.hbm_to_vmem [thread:$0]  (!%p3367_p10), %s3376_s27, 1024, %s3379_s17, %s3382_s13, %s3897_s15, %s3897_s15, %s3899_s18  }
  0x3a   : > { %p381_p9 = scmp.lt.s32.totalorder %s3227_s12, 5  ;;  %p3916_p11 = scmp.ge.s32.totalorder %s3227_s12, 1 }
  0x3b   : > { %s3918_s3 = sld [smem:[#allocation19_spill]]  ;;  %s298_s11 = scalar_lea.vmem [#allocation3], %s3362_s21 }
  0x3c   : > { %p3418_p1 = pnand %p3916_p11, %p381_p9  ;;  %s305_s5 = sshll.u32 %s298_s11, 4  ;;  %s3429_s5 = int_to_ptr.vmem [resolvable:$true] %s305_s5 }
  0x3d   : > { %s295_s27 = scalar_lea.sflag [#allocation4], %s3355_s19 }
  0x3e   : > { %s3917_s16 = scalar_select %p3418_p1, 1, 0 }
  0x41   : > { %s3426_s26 = scalar_lea.hbm %s3918_s3, %s3365_s22  ;;  %s3068_s24 = scalar_lea.hbm %s3918_s3, 2048 }
  0x42   : > { %s3063_s17 = scalar_lea.hbm %s3426_s26, 1024  ;;  %p3069_p7 = scmp.lt.u32.totalorder %s3426_s26, %s3918_s3 }
  0x43   : > { %p3064_p4 = scmp.ne.s32.totalorder %s3426_s26, %s3063_s17  ;;  %p3070_p8 = scmp.lt.u32.totalorder %s3068_s24, %s3063_s17 }
  0x44   : > { %p3072_p0 = scmp.lt.u32.totalorder %s3063_s17, %s3426_s26 }
  0x45   : > { %p3066_p5 = pnand %p3064_p4, %p3388_p13  ;;  %p3071_p12 = por %p3070_p8, %p3069_p7 }
  0x47   : > { %p3067_p6 = pneg %p3066_p5  ;;  %p3073_p2 = por %p3072_p0, %p3071_p12 }
  0x49   : > { %p3074_p3 = pnand %p3073_p2, %p3067_p6 }
  0x4b   : > { %3077 = shalt.err (!%p3074_p3)
}
  0x4c   : > { %s3078_s11 = scalar_lea.vmem %s3429_s5, 1024  ;;  %s3232_s15 = smov [#allocation3]  }
  0x4d   : > { %p3079_p9 = scmp.ne.s32.totalorder %s3429_s5, %s3078_s11  ;;  %s3083_s18 = sshll.u32 %s3232_s15, 4  ;;  %s3084_s18 = int_to_ptr.vmem [resolvable:$false] %s3083_s18 }
  0x4e   : > { %s3085_s29 = scalar_lea.vmem %s3084_s18, 2048  ;;  %p3086_p5 = scmp.lt.s32.totalorder %s3429_s5, %s3084_s18 }
  0x4f   : > { %p3081_p11 = pnand %p3079_p9, %p3388_p13  ;;  %p3087_p1 = scmp.lt.s32.totalorder %s3085_s29, %s3078_s11 }
  0x51   : > { %p3082_p4 = pneg %p3081_p11  ;;  %p3088_p7 = por %p3087_p1, %p3086_p5 }
  0x53   : > { %p3089_p8 = pnand %p3088_p7, %p3082_p4 }
  0x55   : > { %3092 = shalt.err (!%p3089_p8)
}
  0x56   : > { %s3919_s17 = smov 4   ;;  %s3920_s24 = smov 64  }
  0x57   : > { %2869 = dma.hbm_to_vmem [thread:$0]  (!%p3367_p10), %s3426_s26, 1024, %s3429_s5, %s295_s27, %s3920_s24, %s3920_s24, %s3919_s17  }
  0x58   : > { %s3462_s11 = scalar_lea.hbm %s3890_s6, %s3365_s22  ;;  %s348_s18 = scalar_lea.vmem [#allocation7], %s3362_s21 }
  0x59   : > { %s355_s29 = sshll.u32 %s348_s18, 4  ;;  %s3093_s3 = scalar_lea.hbm %s3462_s11, 1024  ;;  %s3465_s29 = int_to_ptr.vmem [resolvable:$true] %s355_s29 }
  0x5a   : > { %p3094_p1 = scmp.ne.s32.totalorder %s3462_s11, %s3093_s3  ;;  %s3098_s26 = scalar_lea.hbm %s3890_s6, 2048 }
  0x5b   : > { %p3099_p0 = scmp.lt.u32.totalorder %s3462_s11, %s3890_s6  ;;  %p3100_p2 = scmp.lt.u32.totalorder %s3098_s26, %s3093_s3 }
  0x5c   : > { %p3096_p6 = pnand %p3094_p1, %p3388_p13  ;;  %p3102_p9 = scmp.lt.u32.totalorder %s3093_s3, %s3462_s11 }
  0x5d   : > { %p3101_p3 = por %p3100_p2, %p3099_p0 }
  0x5e   : > { %p3097_p12 = pneg %p3096_p6 }
  0x5f   : > { %p3103_p11 = por %p3102_p9, %p3101_p3 }
  0x61   : > { %p3104_p4 = pnand %p3103_p11, %p3097_p12 }
  0x63   : > { %3107 = shalt.err (!%p3104_p4)
}
  0x64   : > { %s3108_s21 = scalar_lea.vmem %s3465_s29, 1024  ;;  %s3233_s2 = smov [#allocation7]  }
  0x65   : > { %p3109_p5 = scmp.ne.s32.totalorder %s3465_s29, %s3108_s21  ;;  %s3113_s25 = sshll.u32 %s3233_s2, 4  ;;  %s3114_s25 = int_to_ptr.vmem [resolvable:$false] %s3113_s25 }
  0x66   : > { %s3115_s15 = scalar_lea.vmem %s3114_s25, 2048  ;;  %p3116_p1 = scmp.lt.s32.totalorder %s3465_s29, %s3114_s25 }
  0x67   : > { %p3111_p7 = pnand %p3109_p5, %p3388_p13  ;;  %p3117_p6 = scmp.lt.s32.totalorder %s3115_s15, %s3108_s21 }
  0x69   : > { %p3112_p8 = pneg %p3111_p7  ;;  %p3118_p0 = por %p3117_p6, %p3116_p1 }
  0x6b   : > { %p3119_p2 = pnand %p3118_p0, %p3112_p8 }
  0x6d   : > { %3122 = shalt.err (!%p3119_p2)
}
  0x6e   : > { %2875 = dma.hbm_to_vmem [thread:$0]  (!%p3367_p10), %s3462_s11, 1024, %s3465_s29, %s3382_s13, %s3920_s24, %s3920_s24, %s3919_s17  }
  0x6f   : > { %s2432_s3 = sshll.u32 %s3355_s19, 3  ;;  %s2433_s18 = sshll.u32 %s3219_s10, 7 }
  0x70   : > { %s3497_s27 = scalar_lea.hbm %s3891_s7, %s2433_s18  ;;  %s369_s22 = scalar_lea.vmem [#allocation8], %s2432_s3 }
  0x71   : > { %s376_s21 = sshll.u32 %s369_s22, 4  ;;  %s366_s2 = scalar_lea.sflag [#allocation9], %s3355_s19  ;;  %s377_s21 = int_to_ptr.vmem [resolvable:$true] %s376_s21 }
  0x72   : > { %s3123_s25 = scalar_lea.hbm %s3497_s27, 128  ;;  %s3128_s24 = scalar_lea.hbm %s3891_s7, 256 }
  0x73   : > { %p3124_p12 = scmp.ne.s32.totalorder %s3497_s27, %s3123_s25  ;;  %p3129_p11 = scmp.lt.u32.totalorder %s3497_s27, %s3891_s7 }
  0x74   : > { %p3130_p4 = scmp.lt.u32.totalorder %s3128_s24, %s3123_s25  ;;  %p3132_p7 = scmp.lt.u32.totalorder %s3123_s25, %s3497_s27 }
  0x75   : > { %p3126_p3 = pnand %p3124_p12, %p3388_p13 }
  0x76   : > { %p3131_p5 = por %p3130_p4, %p3129_p11 }
  0x77   : > { %p3127_p9 = pneg %p3126_p3 }
  0x78   : > { %p3133_p8 = por %p3132_p7, %p3131_p5 }
  0x7a   : > { %p3134_p1 = pnand %p3133_p8, %p3127_p9 }
  0x7c   : > { %3137 = shalt.err (!%p3134_p1)
}
  0x7d   : > { %s3138_s19 = scalar_lea.vmem %s377_s21, 128  ;;  %s3234_s15 = smov [#allocation8]  }
  0x7e   : > { %p3139_p6 = scmp.ne.s32.totalorder %s377_s21, %s3138_s19  ;;  %s3143_s3 = sshll.u32 %s3234_s15, 4  ;;  %s3144_s3 = int_to_ptr.vmem [resolvable:$false] %s3143_s3 }
  0x7f   : > { %s3145_s18 = scalar_lea.vmem %s3144_s3, 256  ;;  %p3146_p12 = scmp.lt.s32.totalorder %s377_s21, %s3144_s3 }
  0x80   : > { %p3141_p0 = pnand %p3139_p6, %p3388_p13  ;;  %p3147_p3 = scmp.lt.s32.totalorder %s3145_s18, %s3138_s19 }
  0x82   : > { %p3142_p2 = pneg %p3141_p0  ;;  %p3148_p10 = por %p3147_p3, %p3146_p12 }
  0x84   : > { %p3149_p4 = pnand %p3148_p10, %p3142_p2 }
  0x86   : > { %3152 = shalt.err (!%p3149_p4)
}
  0x87   : > { %p3921_p11 = scmp.ne.s32.totalorder %s3913_s23, 0  ;;  %p3922_p9 = scmp.ne.s32.totalorder %s3917_s16, 0 }
  0x88   : > { %s387_s14 = sand.u32 (!%p3922_p9), 1, %s3203_s28   ;;  %p3923_p13 = scmp.ne.s32.totalorder (!%p3922_p9), %s3912_s20, 0 }
  0x89   : > { %2878 = dma.hbm_to_vmem [thread:$0]  (!%p3921_p11), %s3497_s27, 128, %s377_s21, %s366_s2  }
  0x8a   : > { %385 = sbr.rel (%p3922_p9) target bundleno = 5371 (0x14fb), region = 52  ;;  %s2435_s5 = sshll.u32 (!%p3922_p9), %s387_s14, 6 }
  0x8b   : > { %s388_s26 = scalar_lea.sflag (!%p3922_p9), [#allocation4], %s387_s14  ;;  %s3520_s22 = scalar_lea.vmem (!%p3922_p9), [#allocation3], %s2435_s5 }
  0x91   : > { %3186 = dma.done.wait (%p3923_p13), %s388_s26, 1024  }
  0x92   : > { %3188 = vsyncadd (%p3923_p13), %s388_s26, 4294966272  ;;  %s3924_s25 = sadd.s32 4294967295, %s3227_s12   ;;  %s3528_s21 = scalar_lea.vmem [#allocation5], %s2435_s5 }
  0x93   : > { %s396_s23 = sand.u32 1, %s3924_s25  }
  0x94   : > { %s397_s27 = scalar_lea.sflag [#allocation6], %s396_s23 }
  0x95   : > { %3190 = dma.done.wait (%p3923_p13), %s397_s27, 2048  }
  0x96   : > { %3192 = vsyncadd (%p3923_p13), %s397_s27, 4294965248  ;;  %s2438_s16 = sshll.u32 %s387_s14, 3  ;;  %s3534_s2 = scalar_lea.vmem [#allocation7], %s2435_s5 }
  0x97   : > { %s415_s13 = scalar_lea.sflag [#allocation9], %s387_s14  ;;  %s3536_s17 = scalar_lea.vmem [#allocation8], %s2438_s16 }
  0x98   : > { %3194 = dma.done.wait (%p3923_p13), %s415_s13, 128  }
  0x99   : > { %3196 = vsyncadd (%p3923_p13), %s415_s13, 4294967168  ;;  %p474_p10 = scmp.lt.s32.totalorder %s3215_s9, 1  ;;  %p478_p5 = scmp.lt.s32.totalorder %s3211_s30, 1  ;;  %v488_v0 = vlaneseq  ;;  %v3235_v2 = vmov 0.0  }
  0x9a   : > { %p2444_p7 = scmp.ne.s32.totalorder %s3211_s30, 0 }
  0x9b   : > { %s3942_s9 = smov (!%p474_p10, %s3215_s9), 1  ;;  %v3546_v1 = vand.u32 127, %v488_v0  ;;  %v2445_v14 = vld [vmem:[%s3885_s1] ss:$0 sm:$0xff] (!%p2444_p7)  ;;  %v2446_v16 = vld [vmem:[%s3885_s1 + $0x1] ss:$0 sm:$0xff] (!%p2444_p7) }
  0x9c   : > { %s479_s24 = scalar_select %p478_p5, %s3211_s30, 1 }
  0x9d   : > { %s2439_s11 = sshll.u32 %s3942_s9, 3  ;;  %vm490_vm0 = vcmp.lt.s32.totalorder %v3546_v1, 32  ;;  %496 = sbr.rel (%p2444_p7) target bundleno = 474 (0x1da), region = 72 }
  0x9e   : > { %s477_s20 = scalar_lea.vmem %s3884_s0, %s2439_s11  ;;  %s2566_s15 = sshll.u32 %s479_s24, 4  ;;  %v3554_v3 = vsel %vm490_vm0, 1.0, %v3235_v2 }
  0x9f   : > { %s3559_s14 = scalar_lea.vmem %s3888_s4, %s2566_s15  ;;  %s3564_s9 = scalar_lea.vmem %s3892_s8, %s2439_s11  ;;  %v497_v4 = vld [vmem:[%s477_s20] sm:$0xff] (!%p2444_p7) }
  0xa0   : > { %500 = vadd.xlane.f32.xlu0 (!%p2444_p7), %v497_v4 }
 0x12d   : > { %v501_v5 = vpop.xlane.xlu0 %500 }
 0x12e   : > { %v502_v6 = vmul.f32 0.03125, %v501_v5 }
 0x130   : > { %v503_v7 = vsub.f32 %v497_v4, %v502_v6 }
 0x132   : > { %v504_v8 = vmul.f32 %v3554_v3, %v503_v7 }
 0x134   : > { %v505_v9 = vmul.f32 %v504_v8, %v504_v8 }
 0x136   : > { %506 = vadd.xlane.f32.xlu0 %v505_v9 }
 0x1c3   : > { %v507_v10 = vpop.xlane.xlu0 %506 }
 0x1c4   : > { %v508_v11 = vmul.f32 0.03125, %v507_v10 }
 0x1c6   : > { %v509_v12 = vadd.f32 1e-12, %v508_v11 }
 0x1c8   : > { %2961 = vrsqrt.f32 %v509_v12 }
 0x1d2   : > { %v2962_v13 = vpop.eup %2961 }
 0x1d3   : > { %v511_v15 = vmul.f32 %v2962_v13, %v504_v8 }
 0x1d5   : > { %v516_v17 = vmul.f32 %v2445_v14, %v511_v15 }
 0x1d7   : > { %v521_v18 = vadd.f32 %v2446_v16, %v516_v17 }
 0x1d9   : > { %522 = vst [vmem:[#allocation2] sm:$0xff] %v521_v18 }
 0x1da PF: > { %2651 = vmatprep.subr.bf16.mxu0 %v3235_v2  ;;  %v2963_v19 = vld [vmem:[%s3520_s22] sm:$0xff]   ;;  %2671 = vmatprep.subr.mxu1 %v3235_v2  ;;  %vm3236_vm1 = vmmov 0   ;;  %v2964_v20 = vld [vmem:[%s3520_s22 + $0x8] sm:$0xff]   ;;  %v2965_v21 = vld [vmem:[%s3520_s22 + $0x10] sm:$0xff]   ;;  %s3238_s13 = smov 96   ;;  %s3239_s24 = smov 88  }
 0x1db   : > { %2667 = vmatprep.mubr.msk.bf16.mxu0 %vm3236_vm1, %v3235_v2  ;;  %2673 = vmatprep.mubr.msk.f32.mxu1 %vm3236_vm1, %v3235_v2  ;;  %v2966_v22 = vld [vmem:[%s3520_s22 + $0x18] sm:$0xff]   ;;  %v2967_v23 = vld [vmem:[%s3520_s22 + $0x20] sm:$0xff]   ;;  %v2968_v24 = vld [vmem:[%s3520_s22 + $0x28] sm:$0xff]   ;;  %vm637_vm2 = vcmask 64512   ;;  %s3240_s11 = smov 120   ;;  %s3241_s29 = smov 56  }
 0x1dc   : > { %2652 = vmatpush3.bf16.msra.mxu0 %v2963_v19  ;;  %v2969_v25 = vld [vmem:[%s3520_s22 + $0x30] sm:$0xff]   ;;  %v2970_v26 = vld [vmem:[%s3520_s22 + $0x38] sm:$0xff]   ;;  %v2447_v29 = vld [vmem:[%s3536_s17] ss:$0 sm:$0xff]  ;;  %s3237_s22 = smov 64   ;;  %s3242_s19 = smov 80  }
 0x1dd   : > { %2653 = vmatprep.subr.bf16.mxu0 %v3235_v2  ;;  %s3243_s20 = smov 112   ;;  %v2462_v4 = vld [vmem:[%s3559_s14 + $0x4] sm:$0xf]  ;;  %vm974_vm3 = vcmask 1043456   ;;  %v801_v8 = vld [vmem:[%s3559_s14] sm:$0xf] }
 0x1de   : > { %v976_v7 = vsel %vm974_vm3, %v2462_v4, 0  ;;  %v1022_v12 = vsel %vm974_vm3, %v801_v8, 0  ;;  %s3244_s15 = smov 48   ;;  %s3245_s3 = smov 72  }
 0x1df   : > { %s3246_s18 = smov 104   ;;  %s3247_s5 = smov 40  }
 0x1e0   : > { %2654 = vmatpush3.bf16.msra.mxu0 %v2964_v20  ;;  %v3594_v27 = vld [vmem:[#allocation2] sm:$0xff]  ;;  %p2498_p8 = scmp.ne.s32.totalorder %s3211_s30, 1 }
 0x1e1   : > { %2655 = vmatprep.subr.bf16.mxu0 %v3235_v2  ;;  %v524_v28 = vpack.c.bf16 %v3594_v27, %v3594_v27  ;;  %vm3249_vm4 = vmmov (!%p2498_p8), 0  }
 0x1e4   : > { %2656 = vmatpush3.bf16.msra.mxu0 %v2965_v21 }
 0x1e5   : > { %2657 = vmatprep.subr.bf16.mxu0 %v3235_v2 }
 0x1e8   : > { %2658 = vmatpush3.bf16.msra.mxu0 %v2966_v22 }
 0x1e9   : > { %2659 = vmatprep.subr.bf16.mxu0 %v3235_v2 }
 0x1ec   : > { %2660 = vmatpush3.bf16.msra.mxu0 %v2967_v23 }
 0x1ed   : > { %2661 = vmatprep.subr.bf16.mxu0 %v3235_v2 }
 0x1f0   : > { %2662 = vmatpush3.bf16.msra.mxu0 %v2968_v24 }
 0x1f1   : > { %2663 = vmatprep.subr.bf16.mxu0 %v3235_v2 }
 0x1f4   : > { %2664 = vmatpush3.bf16.msra.mxu0 %v2969_v25 }
 0x1f5   : > { %2665 = vmatprep.subr.bf16.mxu0 %v3235_v2 }
 0x1f8   : > { %2666 = vmatpush3.bf16.msra.mxu0 %v2970_v26 }
 0x1f9   : > { %2708 = vmatprep.subr.mxu0 %v3235_v2 }
 0x1fb   : > { %2668 = vmatmul.mubr.bf16.vlgmr.msra.gmra.mrb[0].mxu0 %v524_v28 }
 0x1fc   : > { %2710 = vmatprep.mubr.msk.f32.mxu0 %vm3236_vm1, %v3235_v2 }
 0x2ce   : > { %v628_v30 = vpop.f32.mrb[0].mxu0 }
 0x2cf   : > { %v3603_v31 = vadd.f32 %v2447_v29, %v628_v30  ;;  %v2669_v32 = vpop.f32.mrb[1].mxu0 }
 0x2d0   : > { %v631_v33 = vpop.f32.mrb[2].mxu0 }
 0x2d1   : > { %724 = vrot.lane.b32.xlu1 %v3603_v31, %s3237_s22  ;;  %635 = vrot.lane.b32.xlu0 %v3603_v31, %s3238_s13  ;;  %v2670_v34 = vpop.f32.mrb[3].mxu0 }
 0x2d5   : > { %804 = vrot.lane.b32.xlu1 %v3603_v31, %s3239_s24 }
 0x343   : > { %v636_v35 = vpop.permute.xlu0 %635  ;;  %v725_v36 = vpop.permute.xlu1 %724 }
 0x344   : > { %2672 = vmatpush3.xpose.msk.msra.mxu1 %vm637_vm2, %v636_v35 }
 0x345   : > { %2676 = vmatprep.subr.mxu1 %v3235_v2 }
 0x347   : > { %2674 = vmatmul.mubr.msk.f32.vlgmr.msra.gmra.mrb[0].mxu1 %vm637_vm2, %v3603_v31  ;;  %v805_v46 = vpop.permute.xlu1 %804 }
 0x348   : > { %2677 = vmatpush3.msra.mxu1 %v725_v36  ;;  %2678 = vmatprep.mubr.msk.f32.mxu1 %vm3236_vm1, %v3235_v2 }
 0x349   : > { %2681 = vmatprep.subr.mxu1 %v3235_v2 }
 0x41a   : > { %v708_v37 = vpop.f32.mrb[0].mxu1 }
 0x41b   : > { %v712_v38 = vmul.f32 0.35355338, %v708_v37  ;;  %v2675_v39 = vpop.f32.mrb[1].mxu1 }
 0x41d   : > { %v713_v40 = vsel %vm637_vm2, %v712_v38, -inf }
 0x41e   : > { %714 = vmax.xlane.f32.xlu0 %v713_v40 }
 0x4ab   : > { %v715_v41 = vpop.xlane.xlu0 %714 }
 0x4ac   : > { %v716_v42 = vsub.f32 %v712_v38, %v715_v41 }
 0x4ae   : > { %v717_v43 = vmul.f32 1.442695, %v716_v42  ;;  %v2468_v42 = vld [vmem:[%s3559_s14 + $0x8] sm:$0xf] }
 0x4b0   : > { %2987 = vpow2.f32 %v717_v43  ;;  %v1237_v43 = vsel %vm974_vm3, %v2468_v42, 0  ;;  %v2980_v42 = vld [vmem:[%s3534_s2 + $0x8] sm:$0xff]  }
 0x4ba   : > { %v2988_v44 = vpop.eup %2987 }
 0x4bb   : > { %v719_v45 = vsel %vm637_vm2, %v2988_v44, 0.0 }
 0x4bc   : > { %720 = vadd.xlane.f32.xlu1 %v719_v45 }
 0x4cd   : > { %802 = vrot.lane.b32.xlu1 %v3603_v31, %s3240_s11 }
 0x549   : > { %v721_v47 = vpop.xlane.xlu1 %720 }
 0x54a   : > { %2989 = vrcp.f32 %v721_v47 }
 0x54d   : > { %v803_v50 = vpop.permute.xlu1 %802 }
 0x554   : > { %v2990_v48 = vpop.eup %2989 }
 0x555   : > { %v723_v49 = vmul.f32 %v2990_v48, %v2988_v44 }
 0x557   : > { %2679 = vmatmul.mubr.msk.f32.vlgmr.msra.gmra.mrb[2].mxu1 %vm637_vm2, %v723_v49 }
 0x558   : > { %2682 = vmatpush3.xpose.msk.msra.mxu1 %vm637_vm2, %v805_v46  ;;  %2683 = vmatprep.mubr.msk.f32.mxu1 %vm3236_vm1, %v3235_v2 }
 0x559   : > { %2686 = vmatprep.subr.mxu1 %v3235_v2 }
 0x55b   : > { %2684 = vmatmul.mubr.msk.f32.vlgmr.msra.gmra.mrb[4].mxu1 %vm637_vm2, %v803_v50 }
 0x55c   : > { %2688 = vmatprep.mubr.msk.f32.mxu1 %vm3236_vm1, %v3235_v2 }
 0x62a   : > { %v796_v51 = vpop.f32.mrb[2].mxu1 }
 0x62b   : > { %v2680_v52 = vpop.f32.mrb[3].mxu1  ;;  %v800_v13 = vpack.c.bf16 %v796_v51, %v796_v51 }
 0x62e   : > { %v876_v53 = vpop.f32.mrb[4].mxu1 }
 0x62f   : > { %v880_v54 = vmul.f32 0.35355338, %v876_v53  ;;  %v2685_v55 = vpop.f32.mrb[5].mxu1 }
 0x631   : > { %v881_v56 = vsel %vm637_vm2, %v880_v54, -inf }
 0x632   : > { %882 = vmax.xlane.f32.xlu1 %v881_v56  ;;  %v2473_v56 = vld [vmem:[%s3559_s14 + $0xc] sm:$0xf]  ;;  %s3925_s14 = sld [smem:[#allocation18_spill]] (!%p2498_p8) }
 0x6bf   : > { %v883_v57 = vpop.xlane.xlu1 %882 }
 0x6c0   : > { %v884_v58 = vsub.f32 %v880_v54, %v883_v57  ;;  %v1453_v57 = vsel %vm974_vm3, %v2473_v56, 0 }
 0x6c2   : > { %v885_v59 = vmul.f32 1.442695, %v884_v58 }
 0x6c4   : > { %2991 = vpow2.f32 %v885_v59 }
 0x6ce   : > { %v2992_v60 = vpop.eup %2991 }
 0x6cf   : > { %v887_v61 = vsel %vm637_vm2, %v2992_v60, 0.0 }
 0x6d0   : > { %888 = vadd.xlane.f32.xlu0 %v887_v61 }
 0x6e6   : > { %892 = vrot.lane.b32.xlu0 %v3603_v31, %s3241_s29 }
 0x6ea   : > { %1066 = vrot.lane.b32.xlu0 %v3603_v31, %s3242_s19 }
 0x6ee   : > { %1064 = vrot.lane.b32.xlu0 %v3603_v31, %s3243_s20 }
 0x75d   : > { %v889_v62 = vpop.xlane.xlu0 %888 }
 0x75e   : > { %2993 = vrcp.f32 %v889_v62 }
 0x761   : > { %v893_v63 = vpop.permute.xlu0 %892 }
 0x762   : > { %2687 = vmatpush3.msra.mxu1 %v893_v63 }
 0x763   : > { %2691 = vmatprep.subr.bf16.mxu1 %v3235_v2 }
 0x765   : > { %v1067_v14 = vpop.permute.xlu0 %1066 }
 0x768   : > { %v2994_v5 = vpop.eup %2993 }
 0x769   : > { %v891_v6 = vmul.f32 %v2994_v5, %v2992_v60  ;;  %v1065_v15 = vpop.permute.xlu0 %1064 }
 0x76b   : > { %2689 = vmatmul.mubr.msk.f32.vlgmr.msra.gmra.mrb[6].mxu1 %vm637_vm2, %v891_v6 }
 0x76c   : > { %2692 = vmatpush3.bf16.msra.mxu1 %v976_v7  ;;  %2693 = vmatprep.mubr.msk.bf16.mxu1 %vm3236_vm1, %v3235_v2 }
 0x76d   : > { %2697 = vmatprep.subr.bf16.mxu1 %v3235_v2 }
 0x83e   : > { %v964_v9 = vpop.f32.mrb[6].mxu1 }
 0x83f   : > { %v968_v10 = vpack.c.bf16 %v964_v9, %v964_v9  ;;  %v2690_v11 = vpop.f32.mrb[7].mxu1 }
 0x841   : > { %2694 = vmatmul.mubr.msk.bf16.vlgmr.msra.gmra.mrb[8].mxu1 %vm637_vm2, %v968_v10  ;;  %v2475_v10 = vld [vmem:[%s3536_s17 + $0x1] ss:$0 sm:$0xff] }
 0x842   : > { %2698 = vmatpush3.bf16.msra.mxu1 %v1022_v12  ;;  %2699 = vmatprep.mubr.msk.bf16.mxu1 %vm3236_vm1, %v3235_v2 }
 0x843   : > { %2703 = vmatprep.subr.mxu1 %v3235_v2 }
 0x849   : > { %2700 = vmatmul.mubr.msk.bf16.vlgmr.msra.gmra.mrb[12].mxu1 %vm637_vm2, %v800_v13 }
 0x84a   : > { %2705 = vmatprep.mubr.msk.f32.mxu1 %vm3236_vm1, %v3235_v2 }
 0x84b   : > { %2704 = vmatpush3.xpose.msk.msra.mxu1 %vm637_vm2, %v1067_v14 }
 0x84c   : > { %2713 = vmatprep.subr.bf16.mxu1 %v3235_v2 }
 0x851   : > { %2706 = vmatmul.mubr.msk.f32.vlgmr.msra.gmra.mrb[16].mxu1 %vm637_vm2, %v1065_v15 }
 0x852   : > { %2715 = vmatprep.mubr.msk.bf16.mxu1 %vm3236_vm1, %v3235_v2  ;;  %2714 = vmatpush3.bf16.msra.mxu1 %v1237_v43  ;;  %v2981_v43 = vld [vmem:[%s3534_s2 + $0x10] sm:$0xff]  }
 0x853   : > { %2729 = vmatprep.subr.bf16.mxu1 %v3235_v2 }
 0x914   : > { %v1012_v16 = vpop.f32.mrb[8].mxu1 }
 0x915   : > { %v2695_v17 = vpop.f32.mrb[9].mxu1 }
 0x916   : > { %v1015_v18 = vpop.f32.mrb[10].mxu1  ;;  %v2971_v17 = vld [vmem:[%s3528_s21] sm:$0xff]  }
 0x917   : > { %v2696_v19 = vpop.f32.mrb[11].mxu1  ;;  %v2972_v18 = vld [vmem:[%s3528_s21 + $0x8] sm:$0xff]  }
 0x91c   : > { %v1058_v20 = vpop.f32.mrb[12].mxu1 }
 0x91d   : > { %v3652_v21 = vadd.f32 %v1058_v20, %v1012_v16  ;;  %v2701_v22 = vpop.f32.mrb[13].mxu1 }
 0x91e   : > { %v1061_v23 = vpop.f32.mrb[14].mxu1 }
 0x91f   : > { %v2702_v24 = vpop.f32.mrb[15].mxu1 }
 0x920   : > { %v2974_v24 = vld [vmem:[%s3528_s21 + $0x18] sm:$0xff]  }
 0x924   : > { %v1138_v25 = vpop.f32.mrb[16].mxu1 }
 0x925   : > { %v1142_v26 = vmul.f32 0.35355338, %v1138_v25  ;;  %v2707_v28 = vpop.f32.mrb[17].mxu1  ;;  %v2975_v25 = vld [vmem:[%s3528_s21 + $0x20] sm:$0xff]  }
 0x926   : > { %v2977_v28 = vld [vmem:[%s3528_s21 + $0x30] sm:$0xff]  }
 0x927   : > { %v1143_v29 = vsel %vm637_vm2, %v1142_v26, -inf }
 0x928   : > { %1144 = vmax.xlane.f32.xlu1 %v1143_v29  ;;  %v2978_v29 = vld [vmem:[%s3528_s21 + $0x38] sm:$0xff]  }
 0x939   : > { %1154 = vrot.lane.b32.xlu1 %v3603_v31, %s3244_s15 }
 0x93d   : > { %1282 = vrot.lane.b32.xlu1 %v3603_v31, %s3245_s3 }
 0x941   : > { %1280 = vrot.lane.b32.xlu1 %v3603_v31, %s3246_s18 }
 0x9b5   : > { %v1145_v30 = vpop.xlane.xlu1 %1144 }
 0x9b6   : > { %v1146_v32 = vsub.f32 %v1142_v26, %v1145_v30  ;;  %v2976_v26 = vld [vmem:[%s3528_s21 + $0x28] sm:$0xff]   ;;  %v2979_v30 = vld [vmem:[%s3534_s2] sm:$0xff]  }
 0x9b8   : > { %v1147_v33 = vmul.f32 1.442695, %v1146_v32 }
 0x9b9   : > { %v1155_v34 = vpop.permute.xlu1 %1154 }
 0x9ba   : > { %2995 = vpow2.f32 %v1147_v33  ;;  %2709 = vmatpush3.msra.mxu0 %v1155_v34 }
 0x9bb   : > { %2719 = vmatprep.subr.mxu0 %v3235_v2 }
 0x9bd   : > { %v1283_v39 = vpop.permute.xlu1 %1282 }
 0x9c1   : > { %v1281_v41 = vpop.permute.xlu1 %1280 }
 0x9c4   : > { %v2996_v35 = vpop.eup %2995 }
 0x9c5   : > { %v1149_v36 = vsel %vm637_vm2, %v2996_v35, 0.0 }
 0x9c6   : > { %1150 = vadd.xlane.f32.xlu0 %v1149_v36  ;;  %v2476_v36 = vld [vmem:[%s3536_s17 + $0x2] ss:$0 sm:$0xff] }
 0xa53   : > { %v1151_v37 = vpop.xlane.xlu0 %1150 }
 0xa54   : > { %2997 = vrcp.f32 %v1151_v37 }
 0xa5e   : > { %v2998_v38 = vpop.eup %2997 }
 0xa5f   : > { %v1153_v40 = vmul.f32 %v2998_v38, %v2996_v35  ;;  %v2477_v38 = vld [vmem:[%s3536_s17 + $0x3] ss:$0 sm:$0xff] }
 0xa61   : > { %2711 = vmatmul.mubr.msk.f32.vlgmr.msra.gmra.mrb[4].mxu0 %vm637_vm2, %v1153_v40 }
 0xa62   : > { %2720 = vmatpush3.xpose.msk.msra.mxu0 %vm637_vm2, %v1283_v39  ;;  %2721 = vmatprep.mubr.msk.f32.mxu0 %vm3236_vm1, %v3235_v2 }
 0xa63   : > { %2724 = vmatprep.subr.mxu0 %v3235_v2 }
 0xa65   : > { %2722 = vmatmul.mubr.msk.f32.vlgmr.msra.gmra.mrb[6].mxu0 %vm637_vm2, %v1281_v41 }
 0xa66   : > { %2726 = vmatprep.mubr.msk.f32.mxu0 %vm3236_vm1, %v3235_v2 }
 0xb34   : > { %v1226_v44 = vpop.f32.mrb[4].mxu0 }
 0xb35   : > { %v1230_v45 = vpack.c.bf16 %v1226_v44, %v1226_v44  ;;  %v2712_v46 = vpop.f32.mrb[5].mxu0  ;;  %v2982_v44 = vld [vmem:[%s3534_s2 + $0x18] sm:$0xff]  }
 0xb36   : > { %v2984_v46 = vld [vmem:[%s3534_s2 + $0x28] sm:$0xff]  }
 0xb37   : > { %2716 = vmatmul.mubr.msk.bf16.vlgmr.msra.gmra.mrb[20].mxu1 %vm637_vm2, %v1230_v45  ;;  %v2983_v45 = vld [vmem:[%s3534_s2 + $0x20] sm:$0xff]  }
 0xb38   : > { %v1354_v47 = vpop.f32.mrb[6].mxu0  ;;  %2731 = vmatprep.mubr.msk.bf16.mxu1 %vm3236_vm1, %v3235_v2  ;;  %2730 = vmatpush3.bf16.msra.mxu1 %v1453_v57 }
 0xb39   : > { %v1358_v48 = vmul.f32 0.35355338, %v1354_v47  ;;  %v2723_v49 = vpop.f32.mrb[7].mxu0  ;;  %2755 = vmatprep.subr.bf16.mxu1 %v3235_v2  ;;  %v2985_v47 = vld [vmem:[%s3534_s2 + $0x30] sm:$0xff]  }
 0xb3a   : > { %v2478_v49 = vld [vmem:[%s3536_s17 + $0x4] ss:$0 sm:$0xff] }
 0xb3b   : > { %v1359_v50 = vsel %vm637_vm2, %v1358_v48, -inf }
 0xb3c   : > { %1360 = vmax.xlane.f32.xlu1 %v1359_v50 }
 0xbc9   : > { %v1361_v51 = vpop.xlane.xlu1 %1360 }
 0xbca   : > { %v1362_v52 = vsub.f32 %v1358_v48, %v1361_v51  ;;  %v2986_v48 = vld [vmem:[%s3534_s2 + $0x38] sm:$0xff]  }
 0xbcc   : > { %v1363_v53 = vmul.f32 1.442695, %v1362_v52 }
 0xbce   : > { %2999 = vpow2.f32 %v1363_v53 }
 0xbd8   : > { %v3000_v54 = vpop.eup %2999 }
 0xbd9   : > { %v1365_v55 = vsel %vm637_vm2, %v3000_v54, 0.0 }
 0xbda   : > { %1366 = vadd.xlane.f32.xlu0 %v1365_v55 }
 0xbf0   : > { %1370 = vrot.lane.b32.xlu0 %v3603_v31, %s3247_s5 }
 0xc0a   : > { %v1273_v58 = vpop.f32.mrb[20].mxu1 }
 0xc0b   : > { %v1279_v59 = vadd.f32 %v1273_v58, %v3652_v21  ;;  %v2717_v60 = vpop.f32.mrb[21].mxu1 }
 0xc0c   : > { %v1276_v61 = vpop.f32.mrb[22].mxu1 }
 0xc0d   : > { %v2718_v62 = vpop.f32.mrb[23].mxu1 }
 0xc67   : > { %v1367_v63 = vpop.xlane.xlu0 %1366 }
 0xc68   : > { %3001 = vrcp.f32 %v1367_v63 }
 0xc6b   : > { %v1371_v4 = vpop.permute.xlu0 %1370 }
 0xc6c   : > { %2725 = vmatpush3.msra.mxu0 %v1371_v4 }
 0xc6d   : > { %2735 = vmatprep.subr.bf16.mxu0 %v3235_v2 }
 0xc72   : > { %v3002_v31 = vpop.eup %3001 }
 0xc73   : > { %v1369_v5 = vmul.f32 %v3002_v31, %v3000_v54 }
 0xc75   : > { %2727 = vmatmul.mubr.msk.f32.vlgmr.msra.gmra.mrb[8].mxu0 %vm637_vm2, %v1369_v5 }
 0xc76   : > { %2751 = vmatprep.mubr.msk.bf16.mxu0 %vm3236_vm1, %v3235_v2  ;;  %2736 = vmatpush3.bf16.msra.mxu0 %v2971_v17 }
 0xc77   : > { %2737 = vmatprep.subr.bf16.mxu0 %v3235_v2 }
 0xc7a   : > { %2738 = vmatpush3.bf16.msra.mxu0 %v2972_v18 }
 0xc7b   : > { %2739 = vmatprep.subr.bf16.mxu0 %v3235_v2 }
 0xd48   : > { %v1442_v6 = vpop.f32.mrb[8].mxu0 }
 0xd49   : > { %v1446_v7 = vpack.c.bf16 %v1442_v6, %v1442_v6  ;;  %v2728_v8 = vpop.f32.mrb[9].mxu0 }
 0xd4b   : > { %2732 = vmatmul.mubr.msk.bf16.vlgmr.msra.gmra.mrb[24].mxu1 %vm637_vm2, %v1446_v7 }
 0xd4c   : > { %2771 = vmatprep.mubr.msk.bf16.mxu1 %vm3236_vm1, %v3235_v2  ;;  %2756 = vmatpush3.bf16.msra.mxu1 %v2979_v30  ;;  %v3012_v30 = vld [vmem:[%s3925_s14 + $0x10] sm:$0xff] (!%p2498_p8)  }
 0xd4d   : > { %2757 = vmatprep.subr.bf16.mxu1 %v3235_v2 }
 0xd50   : > { %2758 = vmatpush3.bf16.msra.mxu1 %v2980_v42  ;;  %v3019_v42 = vld [vmem:[%s3925_s14 + $0x60] sm:$0xff] (!%p2498_p8)  }
 0xd51   : > { %2759 = vmatprep.subr.bf16.mxu1 %v3235_v2 }
 0xd54   : > { %2760 = vmatpush3.bf16.msra.mxu1 %v2981_v43  ;;  %v3021_v43 = vld [vmem:[%s3925_s14 + $0x68] sm:$0xff] (!%p2498_p8)  }
 0xd55   : > { %2761 = vmatprep.subr.bf16.mxu1 %v3235_v2 }
 0xd58   : > { %2762 = vmatpush3.bf16.msra.mxu1 %v2982_v44  ;;  %v3022_v44 = vld [vmem:[%s3925_s14 + $0x38] sm:$0xff] (!%p2498_p8)  }
 0xd59   : > { %2763 = vmatprep.subr.bf16.mxu1 %v3235_v2 }
 0xd5c   : > { %2764 = vmatpush3.bf16.msra.mxu1 %v2983_v45  ;;  %v3023_v45 = vld [vmem:[%s3925_s14 + $0x70] sm:$0xff] (!%p2498_p8)  }
 0xd5d   : > { %2765 = vmatprep.subr.bf16.mxu1 %v3235_v2 }
 0xd60   : > { %2766 = vmatpush3.bf16.msra.mxu1 %v2984_v46  ;;  %v3024_v46 = vld [vmem:[%s3925_s14 + $0x78] sm:$0xff] (!%p2498_p8)  }
 0xd61   : > { %2767 = vmatprep.subr.bf16.mxu1 %v3235_v2 }
 0xd64   : > { %2768 = vmatpush3.bf16.msra.mxu1 %v2985_v47 }
 0xd65   : > { %2769 = vmatprep.subr.bf16.mxu1 %v3235_v2 }
 0xd68   : > { %2770 = vmatpush3.bf16.msra.mxu1 %v2986_v48  ;;  %v3025_v48 = vld [vmem:[%s3925_s14 + $0x80] sm:$0xff] (!%p2498_p8)  }
 0xe1e   : > { %v1489_v9 = vpop.f32.mrb[24].mxu1 }
 0xe1f   : > { %v1495_v11 = vadd.f32 %v1489_v9, %v1279_v59  ;;  %v2733_v12 = vpop.f32.mrb[25].mxu1 }
 0xe20   : > { %v1492_v13 = vpop.f32.mrb[26].mxu1 }
 0xe21   : > { %v1501_v14 = vadd.f32 %v2475_v10, %v1495_v11  ;;  %v2734_v15 = vpop.f32.mrb[27].mxu1 }
 0xe23   : > { %v1502_v16 = vadd.f32 %v1501_v14, %v3594_v27  ;;  %v2973_v27 = vld [vmem:[%s3528_s21 + $0x10] sm:$0xff]  }
 0xe24   : > { %2740 = vmatpush3.bf16.msra.mxu0 %v2973_v27 }
 0xe25   : > { %1505 = vadd.xlane.f32.xlu0 %v1502_v16  ;;  %2741 = vmatprep.subr.bf16.mxu0 %v3235_v2 }
 0xe28   : > { %2742 = vmatpush3.bf16.msra.mxu0 %v2974_v24  ;;  %v1787_v24 = vshrl.u32 (!%p2498_p8), %v488_v0, 7  ;;  %v3010_v0 = vld [vmem:[%s3925_s14 + $0x8] sm:$0xff] (!%p2498_p8)  }
 0xe29   : > { %2743 = vmatprep.subr.bf16.mxu0 %v3235_v2 }
 0xe2c   : > { %2744 = vmatpush3.bf16.msra.mxu0 %v2975_v25  ;;  %v3248_v25 = vmov (!%p2498_p8), 0.0  }
 0xe2d   : > { %2745 = vmatprep.subr.bf16.mxu0 %v3235_v2  ;;  %2775 = vmatprep.subr.bf16.mxu1 (!%p2498_p8), %v3248_v25 }
 0xe30   : > { %2746 = vmatpush3.bf16.msra.mxu0 %v2976_v26 }
 0xe31   : > { %2747 = vmatprep.subr.bf16.mxu0 %v3235_v2 }
 0xe34   : > { %2748 = vmatpush3.bf16.msra.mxu0 %v2977_v28  ;;  %v3740_v28 = vsub.s32 (!%p2498_p8), %v3546_v1, %v1787_v24 }
 0xe35   : > { %2749 = vmatprep.subr.bf16.mxu0 %v3235_v2  ;;  %v2487_v2 = vld [vmem:[%s3536_s17 + $0x5] ss:$0 sm:$0xff] }
 0xe36   : > { %vm1790_vm5 = vcmp.eq.s32.totalorder (!%p2498_p8), %v3740_v28, 4294967295  ;;  %vm1857_vm6 = vcmp.eq.s32.totalorder (!%p2498_p8), %v3740_v28, 0  ;;  %vm2098_vm7 = vcmp.eq.s32.totalorder (!%p2498_p8), %v3740_v28, 1 }
 0xe37   : > { %v2499_v1 = vsel (!%p2498_p8), %vm1790_vm5, 1.0, %v3248_v25 }
 0xe38   : > { %2750 = vmatpush3.bf16.msra.mxu0 %v2978_v29  ;;  %v1793_v29 = vpack.c.bf16 (!%p2498_p8), %v2499_v1, %v2499_v1 }
 0xe39   : > { %2807 = vmatprep.subr.bf16.mxu0 (!%p2498_p8), %v3248_v25 }
 0xeb2   : > { %v1506_v19 = vpop.xlane.xlu0 %1505 }
 0xeb3   : > { %v1507_v20 = vmul.f32 0.03125, %v1506_v19  ;;  %v2496_v19 = vld [vmem:[%s3536_s17 + $0x6] ss:$0 sm:$0xff] }
 0xeb5   : > { %v1508_v21 = vsub.f32 %v1502_v16, %v1507_v20 }
 0xeb7   : > { %v1509_v22 = vmul.f32 %v3554_v3, %v1508_v21  ;;  %v2497_v21 = vld [vmem:[%s3536_s17 + $0x7] ss:$0 sm:$0xff] }
 0xeb9   : > { %v1510_v23 = vmul.f32 %v1509_v22, %v1509_v22 }
 0xebb   : > { %1511 = vadd.xlane.f32.xlu1 %v1510_v23 }
 0xf48   : > { %v1512_v32 = vpop.xlane.xlu1 %1511 }
 0xf49   : > { %v1513_v33 = vmul.f32 0.03125, %v1512_v32  ;;  %v2501_v32 = vsel (!%p2498_p8), %vm1857_vm6, 1.0, %v3248_v25 }
 0xf4b   : > { %v1514_v34 = vadd.f32 1e-12, %v1513_v33  ;;  %v3014_v33 = vld [vmem:[%s3925_s14 + $0x18] sm:$0xff] (!%p2498_p8)  }
 0xf4d   : > { %3003 = vrsqrt.f32 %v1514_v34  ;;  %v1860_v34 = vpack.c.bf16 (!%p2498_p8), %v2501_v32, %v2501_v32 }
 0xf57   : > { %v3004_v35 = vpop.eup %3003 }
 0xf58   : > { %v1516_v37 = vmul.f32 %v3004_v35, %v1509_v22  ;;  %v3011_v35 = vld [vmem:[%s3925_s14 + $0x40] sm:$0xff] (!%p2498_p8)  }
 0xf5a   : > { %v1521_v39 = vmul.f32 %v2476_v36, %v1516_v37  ;;  %v3016_v36 = vld [vmem:[%s3925_s14 + $0x20] sm:$0xff] (!%p2498_p8)   ;;  %v3013_v37 = vld [vmem:[%s3925_s14 + $0x48] sm:$0xff] (!%p2498_p8)  }
 0xf5c   : > { %v1526_v40 = vadd.f32 %v2477_v38, %v1521_v39  ;;  %v3018_v38 = vld [vmem:[%s3925_s14 + $0x28] sm:$0xff] (!%p2498_p8)   ;;  %v3015_v39 = vld [vmem:[%s3925_s14 + $0x50] sm:$0xff] (!%p2498_p8)  }
 0xf5e   : > { %v1527_v41 = vpack.c.bf16 %v1526_v40, %v1526_v40 }
 0xf60   : > { %2752 = vmatmul.mubr.bf16.vlgmr.msra.gmra.mrb[12].mxu0 %v1527_v41  ;;  %v3017_v41 = vld [vmem:[%s3925_s14 + $0x58] sm:$0xff] (!%p2498_p8)  }
 0xf61   : > { %2823 = vmatprep.mubr.msk.bf16.mxu0 (!%p2498_p8), %vm3249_vm4, %v3248_v25 }
0x1033   : > { %v1631_v50 = vpop.f32.mrb[12].mxu0 }
0x1034   : > { %v1632_v51 = vadd.f32 %v2478_v49, %v1631_v50  ;;  %v2753_v52 = vpop.f32.mrb[13].mxu0 }
0x1035   : > { %v1634_v53 = vpop.f32.mrb[14].mxu0 }
0x1036   : > { %v1638_v54 = vmul.f32 0.044715, %v1632_v51  ;;  %v2754_v55 = vpop.f32.mrb[15].mxu0  ;;  %v1637_v61 = vmul.f32 0.5, %v1632_v51  ;;  %v3026_v53 = vld [vmem:[%s3925_s14 + $0x88] sm:$0xff] (!%p2498_p8)  }
0x1038   : > { %v1639_v56 = vmul.f32 %v1638_v54, %v1632_v51 }
0x103a   : > { %v1640_v57 = vmul.f32 %v1639_v56, %v1632_v51 }
0x103c   : > { %v1641_v58 = vadd.f32 %v1640_v57, %v1632_v51  ;;  %v3027_v57 = vld [vmem:[%s3925_s14 + $0x90] sm:$0xff] (!%p2498_p8)  }
0x103e   : > { %v1642_v59 = vmul.f32 0.7978846, %v1641_v58 }
0x1040   : > { %3005 = vtanh.f32 %v1642_v59 }
0x104a   : > { %v3006_v60 = vpop.eup %3005 }
0x104b   : > { %v1644_v62 = vadd.f32 1.0, %v3006_v60  ;;  %v2535_v60 = vsel (!%p2498_p8), %vm2098_vm7, 1.0, %v3248_v25 }
0x104d   : > { %v1645_v63 = vmul.f32 %v1644_v62, %v1637_v61  ;;  %v3028_v61 = vld [vmem:[%s3925_s14 + $0x98] sm:$0xff] (!%p2498_p8)   ;;  %v2101_v62 = vpack.c.bf16 (!%p2498_p8), %v2535_v60, %v2535_v60 }
0x104f   : > { %v1646_v4 = vpack.c.bf16 %v1645_v63, %v1645_v63  ;;  %v3029_v63 = vld [vmem:[%s3925_s14 + $0xa0] sm:$0xff] (!%p2498_p8)  }
0x1051   : > { %2772 = vmatmul.mubr.bf16.vlgmr.msra.gmra.mrb[28].mxu1 %v1646_v4  ;;  %v3030_v4 = vld [vmem:[%s3925_s14 + $0xa8] sm:$0xff] (!%p2498_p8)  }
0x1052   : > { %2777 = vmatprep.mubr.msk.bf16.mxu1 (!%p2498_p8), %vm3249_vm4, %v3248_v25 }
0x1124   : > { %v1750_v31 = vpop.f32.mrb[28].mxu1 }
0x1125   : > { %v1751_v5 = vadd.f32 %v2487_v2, %v1750_v31  ;;  %v2773_v6 = vpop.f32.mrb[29].mxu1  ;;  %v3031_v2 = vld [vmem:[%s3925_s14 + $0xb0] sm:$0xff] (!%p2498_p8)   ;;  %v3032_v31 = vld [vmem:[%s3925_s14 + $0xb8] sm:$0xff] (!%p2498_p8)  }
0x1126   : > { %v1753_v7 = vpop.f32.mrb[30].mxu1 }
0x1127   : > { %v2774_v8 = vpop.f32.mrb[31].mxu1  ;;  %v1756_v9 = vadd.f32 %v1751_v5, %v1526_v40  ;;  %v3020_v40 = vld [vmem:[%s3925_s14 + $0x30] sm:$0xff] (!%p2498_p8)  }
0x1129   : > { %1759 = vadd.xlane.f32.xlu1 %v1756_v9 }
0x11b6   : > { %v1760_v10 = vpop.xlane.xlu1 %1759 }
0x11b7   : > { %v1761_v11 = vmul.f32 0.03125, %v1760_v10 }
0x11b9   : > { %v1762_v12 = vsub.f32 %v1756_v9, %v1761_v11 }
0x11bb   : > { %v1763_v13 = vmul.f32 %v3554_v3, %v1762_v12  ;;  %v3009_v3 = vld [vmem:[%s3925_s14] sm:$0xff] (!%p2498_p8)  }
0x11bc   : > { %2808 = vmatpush3.bf16.msra.mxu0 (!%p2498_p8), %v3009_v3 }
0x11bd   : > { %v1764_v14 = vmul.f32 %v1763_v13, %v1763_v13  ;;  %2809 = vmatprep.subr.bf16.mxu0 (!%p2498_p8), %v3248_v25 }
0x11bf   : > { %1765 = vadd.xlane.f32.xlu1 %v1764_v14 }
0x11c0   : > { %2810 = vmatpush3.bf16.msra.mxu0 (!%p2498_p8), %v3010_v0 }
0x11c1   : > { %2811 = vmatprep.subr.bf16.mxu0 (!%p2498_p8), %v3248_v25 }
0x11c4   : > { %2812 = vmatpush3.bf16.msra.mxu0 (!%p2498_p8), %v3012_v30 }
0x11c5   : > { %2813 = vmatprep.subr.bf16.mxu0 (!%p2498_p8), %v3248_v25 }
0x11c8   : > { %2814 = vmatpush3.bf16.msra.mxu0 (!%p2498_p8), %v3014_v33 }
0x11c9   : > { %2815 = vmatprep.subr.bf16.mxu0 (!%p2498_p8), %v3248_v25 }
0x11cc   : > { %2816 = vmatpush3.bf16.msra.mxu0 (!%p2498_p8), %v3016_v36 }
0x11cd   : > { %2817 = vmatprep.subr.bf16.mxu0 (!%p2498_p8), %v3248_v25 }
0x11d0   : > { %2818 = vmatpush3.bf16.msra.mxu0 (!%p2498_p8), %v3018_v38 }
0x11d1   : > { %2819 = vmatprep.subr.bf16.mxu0 (!%p2498_p8), %v3248_v25 }
0x11d4   : > { %2820 = vmatpush3.bf16.msra.mxu0 (!%p2498_p8), %v3020_v40 }
0x11d5   : > { %2821 = vmatprep.subr.bf16.mxu0 (!%p2498_p8), %v3248_v25 }
0x11d8   : > { %2822 = vmatpush3.bf16.msra.mxu0 (!%p2498_p8), %v3022_v44 }
0x11d9   : > { %2833 = vmatprep.subr.bf16.mxu0 (!%p2498_p8), %v3248_v25 }
0x124c   : > { %v1766_v15 = vpop.xlane.xlu1 %1765 }
0x124d   : > { %v1767_v16 = vmul.f32 0.03125, %v1766_v15 }
0x124f   : > { %v1768_v17 = vadd.f32 1e-12, %v1767_v16 }
0x1251   : > { %3007 = vrsqrt.f32 %v1768_v17 }
0x125b   : > { %v3008_v18 = vpop.eup %3007 }
0x125c   : > { %v1770_v20 = vmul.f32 %v3008_v18, %v1763_v13  ;;  %1785 = sbr.rel (%p2498_p8) target bundleno = 5371 (0x14fb), region = 76 }
0x125e   : > { %v1775_v22 = vmul.f32 %v2496_v19, %v1770_v20 }
0x1260   : > { %v1780_v23 = vadd.f32 %v2497_v21, %v1775_v22 }
0x1262   : > { %1781 = vst [vmem:[#allocation2] sm:$0xff] %v1780_v23  ;;  %v1788_v27 = vpack.c.bf16 (!%p2498_p8), %v1780_v23, %v1780_v23 }
0x1264   : > { %v3737_v26 = vsel %vm974_vm3, %v1788_v27, 0 }
0x1265   : > { %2776 = vmatpush3.bf16.msra.mxu1 %v3737_v26 }
0x1266   : > { %2781 = vmatprep.subr.bf16.mxu1 %v3248_v25 }
0x1268   : > { %2778 = vmatmul.mubr.msk.bf16.vlgmr.msra.gmra.mrb[0].mxu1 %vm637_vm2, %v1793_v29 }
0x1269   : > { %2782 = vmatpush3.bf16.msra.mxu1 %v3737_v26  ;;  %2783 = vmatprep.mubr.msk.bf16.mxu1 %vm3249_vm4, %v3248_v25 }
0x126a   : > { %2787 = vmatprep.subr.bf16.mxu1 %v3248_v25 }
0x1270   : > { %2784 = vmatmul.mubr.msk.bf16.vlgmr.msra.gmra.mrb[4].mxu1 %vm637_vm2, %v1860_v34 }
0x1271   : > { %2788 = vmatpush3.bf16.msra.mxu1 %v3011_v35  ;;  %2803 = vmatprep.mubr.msk.bf16.mxu1 %vm3249_vm4, %v3248_v25 }
0x1272   : > { %2789 = vmatprep.subr.bf16.mxu1 %v3248_v25 }
0x1275   : > { %2790 = vmatpush3.bf16.msra.mxu1 %v3013_v37 }
0x1276   : > { %2791 = vmatprep.subr.bf16.mxu1 %v3248_v25 }
0x1279   : > { %2792 = vmatpush3.bf16.msra.mxu1 %v3015_v39 }
0x127a   : > { %2793 = vmatprep.subr.bf16.mxu1 %v3248_v25 }
0x127d   : > { %2794 = vmatpush3.bf16.msra.mxu1 %v3017_v41 }
0x127e   : > { %2795 = vmatprep.subr.bf16.mxu1 %v3248_v25 }
0x1281   : > { %2796 = vmatpush3.bf16.msra.mxu1 %v3019_v42 }
0x1282   : > { %2797 = vmatprep.subr.bf16.mxu1 %v3248_v25 }
0x1285   : > { %2798 = vmatpush3.bf16.msra.mxu1 %v3021_v43 }
0x1286   : > { %2799 = vmatprep.subr.bf16.mxu1 %v3248_v25 }
0x1289   : > { %2800 = vmatpush3.bf16.msra.mxu1 %v3023_v45 }
0x128a   : > { %2801 = vmatprep.subr.bf16.mxu1 %v3248_v25 }
0x128d   : > { %2802 = vmatpush3.bf16.msra.mxu1 %v3024_v46 }
0x128e   : > { %2827 = vmatprep.subr.bf16.mxu1 %v3248_v25 }
0x133b   : > { %v1834_v47 = vpop.f32.mrb[0].mxu1 }
0x133c   : > { %v1840_v49 = vpack.c.bf16 %v1834_v47, %v1834_v47  ;;  %v2779_v50 = vpop.f32.mrb[1].mxu1 }
0x133d   : > { %v1837_v51 = vpop.f32.mrb[2].mxu1 }
0x133e   : > { %v2780_v52 = vpop.f32.mrb[3].mxu1  ;;  %2824 = vmatmul.mubr.bf16.vlgmr.msra.gmra.mrb[0].mxu0 %v1840_v49 }
0x133f   : > { %2834 = vmatpush3.bf16.msra.mxu0 %v3025_v48  ;;  %2849 = vmatprep.mubr.msk.bf16.mxu0 %vm3249_vm4, %v3248_v25 }
0x1340   : > { %2835 = vmatprep.subr.bf16.mxu0 %v3248_v25 }
0x1343   : > { %v1898_v54 = vpop.f32.mrb[4].mxu1  ;;  %2836 = vmatpush3.bf16.msra.mxu0 %v3026_v53 }
0x1344   : > { %v1904_v55 = vpack.c.bf16 %v1898_v54, %v1898_v54  ;;  %v2785_v56 = vpop.f32.mrb[5].mxu1  ;;  %2837 = vmatprep.subr.bf16.mxu0 %v3248_v25 }
0x1345   : > { %v1901_v58 = vpop.f32.mrb[6].mxu1 }
0x1346   : > { %v2786_v59 = vpop.f32.mrb[7].mxu1  ;;  %2804 = vmatmul.mubr.bf16.vlgmr.msra.gmra.mrb[8].mxu1 %v1904_v55 }
0x1347   : > { %2828 = vmatpush3.bf16.msra.mxu1 %v3737_v26  ;;  %2829 = vmatprep.mubr.msk.bf16.mxu1 %vm3249_vm4, %v3248_v25 }
0x1348   : > { %2838 = vmatpush3.bf16.msra.mxu0 %v3027_v57 }
0x1349   : > { %2839 = vmatprep.subr.bf16.mxu0 %v3248_v25 }
0x134c   : > { %2840 = vmatpush3.bf16.msra.mxu0 %v3028_v61 }
0x134d   : > { %2841 = vmatprep.subr.bf16.mxu0 %v3248_v25 }
0x134e   : > { %2830 = vmatmul.mubr.msk.bf16.vlgmr.msra.gmra.mrb[12].mxu1 %vm637_vm2, %v2101_v62 }
0x1350   : > { %2842 = vmatpush3.bf16.msra.mxu0 %v3029_v63 }
0x1351   : > { %2843 = vmatprep.subr.bf16.mxu0 %v3248_v25 }
0x1354   : > { %2844 = vmatpush3.bf16.msra.mxu0 %v3030_v4 }
0x1355   : > { %2845 = vmatprep.subr.bf16.mxu0 %v3248_v25 }
0x1358   : > { %2846 = vmatpush3.bf16.msra.mxu0 %v3031_v2 }
0x1359   : > { %2847 = vmatprep.subr.bf16.mxu0 %v3248_v25 }
0x135c   : > { %2848 = vmatpush3.bf16.msra.mxu0 %v3032_v31 }
0x1419   : > { %v2004_v5 = vpop.f32.mrb[8].mxu1 }
0x141a   : > { %v2805_v6 = vpop.f32.mrb[9].mxu1 }
0x141b   : > { %v2007_v7 = vpop.f32.mrb[10].mxu1 }
0x141c   : > { %v2806_v8 = vpop.f32.mrb[11].mxu1 }
0x1421   : > { %v2139_v9 = vpop.f32.mrb[12].mxu1 }
0x1422   : > { %v2145_v10 = vpack.c.bf16 %v2139_v9, %v2139_v9  ;;  %v2831_v11 = vpop.f32.mrb[13].mxu1 }
0x1423   : > { %v2142_v12 = vpop.f32.mrb[14].mxu1 }
0x1424   : > { %v2832_v13 = vpop.f32.mrb[15].mxu1  ;;  %2850 = vmatmul.mubr.bf16.vlgmr.msra.gmra.mrb[0].mxu0 %v2145_v10 }
0x14f7   : > { %v2245_v14 = vpop.f32.mrb[0].mxu0 }
0x14f8   : > { %v2853_v15 = vadd.f32 %v2245_v14, %v2004_v5  ;;  %v2851_v16 = vpop.f32.mrb[1].mxu0 }
0x14f9   : > { %v2248_v17 = vpop.f32.mrb[2].mxu0 }
0x14fa   : > { %2252 = vst [vmem:[%s3564_s9] sm:$0xff] %v2853_v15  ;;  %v2852_v18 = vpop.f32.mrb[3].mxu0 }
0x14fb PF: > { %s27_s12 = sadd.s32 1, %s3227_s12   ;;  %s3926_s16 = sld [smem:[#allocation13_spill]] }
0x14fc   : > { %p24_p1 = scmp.ge.s32.totalorder %s27_s12, 6   ;;  %s3927_s29 = sld [smem:[#allocation17_spill]] }
0x14fd   : > { %s3928_s9 = sld [smem:[#allocation14_spill]]  ;;  %s3929_s22 = sld [smem:[#allocation15_spill]] }
0x14fe   : > { %s3930_s11 = sld [smem:[#allocation16_spill]]  ;;  %s3931_s27 = smov %s3203_s28 }
0x14ff   : > { %s3933_s30 = smov %s3219_s10  ;;  %26 = sbr.rel (!%p24_p1) target bundleno = 13 (0xd), region = 148 }
0x1501   : > { %s3932_s28 = smov %s3926_s16 }
0x1503   : > { %s3934_s10 = smov %s3929_s22 }
0x1506   :  { %2272 = vsyncpa [#allocation4], 1 }
0x1507   :  { %2274 = vsyncpa [#allocation4 + $0x1], 1 }
0x1508   :  { %2275 = vsyncpa [#allocation6], 1 }
0x1509   :  { %2277 = vsyncpa [#allocation6 + $0x1], 1 }
0x150a   :  { %2278 = vsyncpa [#allocation9], 1 }
0x150b   :  { %2280 = vsyncpa [#allocation9 + $0x1], 1 }

</bundles_post_ra>
